<compile_context>
chip_gen: v6e
topology: v6e:2x2x1
jax: 0.10.0
libtpu: 0.0.40
codegen_flags: <defaults>
</compile_context>

<pallas_src>
import functools

import jax
import jax.numpy as jnp
from jax.experimental import pallas as pl
from jax.experimental.pallas import tpu as pltpu


def _center_loss_kernel(labels_ref, x_ref, centers_ref, out_ref,
                        gbuf, sem, acc_ref, *, tb, batch):
    """Per-B-tile kernel.

    labels_ref : (B_pad,)    int32  SMEM (scalar-prefetched)
    x_ref      : (tb, D)     f32    VMEM (auto-pipelined tile of x)
    centers_ref: (C, D)      f32    HBM  (memory_space=pl.ANY, manual gather)
    out_ref    : (1, 1)      f32    SMEM scalar output
    gbuf       : (2, tb, D)  f32    VMEM scratch, double-buffered gather dst
    sem        : (2, tb)     DMA semaphores
    acc_ref    : (1, 1)      f32    SMEM scratch accumulator (persists across grid)
    """
    i = pl.program_id(0)
    n = pl.num_programs(0)
    slot = i & 1

    def start_gather(tile_idx, slot_idx):
        base = tile_idx * tb
        for r in range(tb):
            lbl = labels_ref[base + r]
            pltpu.make_async_copy(
                centers_ref.at[lbl], gbuf.at[slot_idx, r], sem.at[slot_idx, r]
            ).start()

    def wait_gather(slot_idx):
        for r in range(tb):
            pltpu.make_async_copy(
                centers_ref.at[0], gbuf.at[slot_idx, r], sem.at[slot_idx, r]
            ).wait()

    # Prime the pipeline: gather tile 0 into slot 0 on the first grid step.
    @pl.when(i == 0)
    def _prime():
        start_gather(0, 0)

    # Prefetch next tile's gathered centers while this tile is processed.
    @pl.when(i + 1 < n)
    def _prefetch():
        start_gather(i + 1, 1 - slot)

    # Zero the scalar accumulator once.
    @pl.when(i == 0)
    def _init():
        acc_ref[0, 0] = jnp.float32(0.0)

    wait_gather(slot)

    x = x_ref[...]          # (tb, D) f32
    c = gbuf[slot]          # (tb, D) f32 : centers[labels[b]] for this tile

    # Same expansion as the PyTorch reference (||x||^2 + ||c||^2 - 2<x,c>),
    # evaluated only on the surviving diagonal -> pure VPU, no (B, C) distmat.
    x_sq = jnp.sum(x * x, axis=1, keepdims=True)   # (tb, 1)
    c_sq = jnp.sum(c * c, axis=1, keepdims=True)   # (tb, 1)
    xc = jnp.sum(x * c, axis=1, keepdims=True)     # (tb, 1)
    d = x_sq + c_sq - 2.0 * xc
    d = jnp.clip(d, jnp.float32(1e-12), jnp.float32(1e12))

    # Mask padded rows (batch rounded up to a multiple of tb).
    row_ids = i * tb + jax.lax.broadcasted_iota(jnp.int32, (tb, 1), 0)
    d = jnp.where(row_ids < batch, d, jnp.float32(0.0))

    acc_ref[0, 0] += jnp.sum(d)

    @pl.when(i == n - 1)
    def _finalize():
        out_ref[0, 0] = acc_ref[0, 0]


def center_loss(x, centers, labels, *, tb=8):
    """x: (B, D) f32, centers: (C, D) f32, labels: (B,) int -> scalar f32."""
    x = x.astype(jnp.float32)
    centers = centers.astype(jnp.float32)
    labels = labels.astype(jnp.int32)
    B, D = x.shape
    C = centers.shape[0]

    tb = max(8, int(tb))                 # sublane-aligned B tile
    num_tiles = -(-B // tb)
    b_pad = num_tiles * tb
    if b_pad != B:
        x = jnp.pad(x, ((0, b_pad - B), (0, 0)))
        labels = jnp.pad(labels, (0, b_pad - B))   # pad labels -> row 0 (masked out)

    kernel = functools.partial(_center_loss_kernel, tb=tb, batch=B)

    grid_spec = pltpu.PrefetchScalarGridSpec(
        num_scalar_prefetch=1,                       # labels -> SMEM
        grid=(num_tiles,),
        in_specs=[
            pl.BlockSpec((tb, D), lambda i, lbl_ref: (i, 0)),   # x, auto-pipelined
            pl.BlockSpec(memory_space=pl.ANY),                  # centers stay in HBM
        ],
        out_specs=pl.BlockSpec((1, 1), lambda i, lbl_ref: (0, 0),
                               memory_space=pltpu.MemorySpace.SMEM),
        scratch_shapes=[
            pltpu.VMEM((2, tb, D), jnp.float32),     # double-buffered gather dst
            pltpu.SemaphoreType.DMA((2, tb)),
            pltpu.SMEM((1, 1), jnp.float32),         # scalar accumulator
        ],
    )

    out = pl.pallas_call(
        kernel,
        out_shape=jax.ShapeDtypeStruct((1, 1), jnp.float32),
        grid_spec=grid_spec,
        compiler_params=pltpu.CompilerParams(
            # Reduction into a single scalar + cross-step DMA prefetch
            # => the B axis must stay sequential.
            dimension_semantics=(pltpu.ARBITRARY,),
            vmem_limit_bytes=32 * 1024 * 1024,
        ),
    )(labels, x, centers)

    # The PyTorch clamp lifts every masked-out zero to 1e-12: add those
    # B*(C-1) contributions back analytically to keep exact semantics.
    masked_zeros = jnp.float32(float(B) * float(C - 1) * 1e-12)
    return (out[0, 0] + masked_zeros) / jnp.float32(B)


def center_loss_ref(x, centers, labels):
    """Pure-JAX dense reference mirroring the PyTorch forward exactly."""
    B = x.shape[0]
    C = centers.shape[0]
    distmat = (
        jnp.sum(x**2, axis=1, keepdims=True)
        + jnp.sum(centers**2, axis=1, keepdims=True).T
        - 2.0 * (x @ centers.T)
    )
    mask = labels[:, None] == jnp.arange(C)[None, :]
    dist = distmat * mask.astype(jnp.float32)
    return jnp.clip(dist, 1e-12, 1e12).sum() / B


if __name__ == "__main__":
    # Small, deterministic shapes consistent with the module; D multiple of 128
    # for lane-dense tiles, B a multiple of the 8-row tile -> 4 grid steps.
    batch, feat_dim, num_classes = 32, 256, 64

    key = jax.random.PRNGKey(0)
    k_x, k_c, k_l = jax.random.split(key, 3)

    x = jax.random.normal(k_x, (batch, feat_dim), dtype=jnp.float32)
    centers = jax.random.normal(k_c, (num_classes, feat_dim), dtype=jnp.float32)
    labels = jax.random.randint(k_l, (batch,), 0, num_classes, dtype=jnp.int32)

    loss = center_loss(x, centers, labels, tb=8)
    jax.block_until_ready(loss)
    ref = center_loss_ref(x, centers, labels)
    assert jnp.allclose(loss, ref, rtol=1e-4, atol=1e-4), (loss, ref)

    # Ragged batch exercises the padded-row masking path.
    loss2 = center_loss(x[:13], centers, labels[:13], tb=8)
    jax.block_until_ready(loss2)
    ref2 = center_loss_ref(x[:13], centers, labels[:13])
    assert jnp.allclose(loss2, ref2, rtol=1e-4, atol=1e-4), (loss2, ref2)

    print("KERNEL_OK")
</pallas_src>

<mosaic_0001>
module attributes {stable_mosaic.version = 11 : i64} {
  func.func @_center_loss_kernel(%arg0: i32, %arg1: memref<32xi32, #tpu.memory_space<smem>>, %arg2: memref<8x256xf32, #tpu.memory_space<vmem>>, %arg3: memref<64x256xf32, #tpu.memory_space<any>>, %arg4: memref<1x1xf32, #tpu.memory_space<smem>>, %arg5: memref<2x8x256xf32, #tpu.memory_space<vmem>>, %arg6: memref<2x8x!tpu.dma_semaphore, #tpu.memory_space<semaphore_mem>>, %arg7: memref<1x1xf32, #tpu.memory_space<smem>>) attributes {dimension_semantics = [#tpu.dimension_semantics<arbitrary>], iteration_bounds = array<i64: 4>, scalar_prefetch = 1 : i64, scratch_operands = 3 : i64, tpu.core_type = #tpu.core_type<tc>, window_params = [{transform_indices = @transform_0, window_bounds = array<i64: 8, 256>}, {}, {transform_indices = @transform_2, window_bounds = array<i64: 1, 1>}]} {
    %c1_i32 = arith.constant 1 : i32
    %0 = arith.andi %arg0, %c1_i32 : i32
    %c0_i32 = arith.constant 0 : i32
    %1 = arith.cmpi eq, %arg0, %c0_i32 : i32
    %2 = arith.extui %1 : i1 to i32
    %c0_i32_0 = arith.constant 0 : i32
    %3 = arith.cmpi ne, %2, %c0_i32_0 : i32
    scf.if %3 {
      %c0_56 = arith.constant 0 : index
      %98 = memref.load %arg1[%c0_56] : memref<32xi32, #tpu.memory_space<smem>>
      %c0_i32_57 = arith.constant 0 : i32
      %c0_i32_58 = arith.constant 0 : i32
      %c0_i32_59 = arith.constant 0 : i32
      %c0_i32_60 = arith.constant 0 : i32
      %c0_i32_61 = arith.constant 0 : i32
      %99 = tpu.memref_slice %arg3[%98, %c0_i32_61] : memref<64x256xf32, #tpu.memory_space<any>> -> memref<1x256xf32, #tpu.memory_space<any>>
      %100 = tpu.memref_squeeze %99 : memref<1x256xf32, #tpu.memory_space<any>> -> memref<256xf32, #tpu.memory_space<any>>
      %c0_i32_62 = arith.constant 0 : i32
      %101 = tpu.memref_slice %arg5[%c0_i32_57, %c0_i32_58, %c0_i32_62] : memref<2x8x256xf32, #tpu.memory_space<vmem>> -> memref<1x1x256xf32, #tpu.memory_space<vmem>>
      %102 = tpu.memref_squeeze %101 : memref<1x1x256xf32, #tpu.memory_space<vmem>> -> memref<256xf32, #tpu.memory_space<vmem>>
      %103 = tpu.memref_slice %arg6[%c0_i32_59, %c0_i32_60] : memref<2x8x!tpu.dma_semaphore, #tpu.memory_space<semaphore_mem>> -> memref<1x1x!tpu.dma_semaphore, #tpu.memory_space<semaphore_mem>>
      %104 = tpu.memref_squeeze %103 : memref<1x1x!tpu.dma_semaphore, #tpu.memory_space<semaphore_mem>> -> memref<!tpu.dma_semaphore, #tpu.memory_space<semaphore_mem>>
      tpu.enqueue_dma source(%100 : memref<256xf32, #tpu.memory_space<any>>) target(%102 : memref<256xf32, #tpu.memory_space<vmem>>) target_semaphore(%104 : memref<!tpu.dma_semaphore, #tpu.memory_space<semaphore_mem>>)
      %c1 = arith.constant 1 : index
      %105 = memref.load %arg1[%c1] : memref<32xi32, #tpu.memory_space<smem>>
      %c0_i32_63 = arith.constant 0 : i32
      %c1_i32_64 = arith.constant 1 : i32
      %c0_i32_65 = arith.constant 0 : i32
      %c1_i32_66 = arith.constant 1 : i32
      %c0_i32_67 = arith.constant 0 : i32
      %106 = tpu.memref_slice %arg3[%105, %c0_i32_67] : memref<64x256xf32, #tpu.memory_space<any>> -> memref<1x256xf32, #tpu.memory_space<any>>
      %107 = tpu.memref_squeeze %106 : memref<1x256xf32, #tpu.memory_space<any>> -> memref<256xf32, #tpu.memory_space<any>>
      %c0_i32_68 = arith.constant 0 : i32
      %108 = tpu.memref_slice %arg5[%c0_i32_63, %c1_i32_64, %c0_i32_68] : memref<2x8x256xf32, #tpu.memory_space<vmem>> -> memref<1x1x256xf32, #tpu.memory_space<vmem>>
      %109 = tpu.memref_squeeze %108 : memref<1x1x256xf32, #tpu.memory_space<vmem>> -> memref<256xf32, #tpu.memory_space<vmem>>
      %110 = tpu.memref_slice %arg6[%c0_i32_65, %c1_i32_66] : memref<2x8x!tpu.dma_semaphore, #tpu.memory_space<semaphore_mem>> -> memref<1x1x!tpu.dma_semaphore, #tpu.memory_space<semaphore_mem>>
      %111 = tpu.memref_squeeze %110 : memref<1x1x!tpu.dma_semaphore, #tpu.memory_space<semaphore_mem>> -> memref<!tpu.dma_semaphore, #tpu.memory_space<semaphore_mem>>
      tpu.enqueue_dma source(%107 : memref<256xf32, #tpu.memory_space<any>>) target(%109 : memref<256xf32, #tpu.memory_space<vmem>>) target_semaphore(%111 : memref<!tpu.dma_semaphore, #tpu.memory_space<semaphore_mem>>)
      %c2 = arith.constant 2 : index
      %112 = memref.load %arg1[%c2] : memref<32xi32, #tpu.memory_space<smem>>
      %c0_i32_69 = arith.constant 0 : i32
      %c2_i32_70 = arith.constant 2 : i32
      %c0_i32_71 = arith.constant 0 : i32
      %c2_i32_72 = arith.constant 2 : i32
      %c0_i32_73 = arith.constant 0 : i32
      %113 = tpu.memref_slice %arg3[%112, %c0_i32_73] : memref<64x256xf32, #tpu.memory_space<any>> -> memref<1x256xf32, #tpu.memory_space<any>>
      %114 = tpu.memref_squeeze %113 : memref<1x256xf32, #tpu.memory_space<any>> -> memref<256xf32, #tpu.memory_space<any>>
      %c0_i32_74 = arith.constant 0 : i32
      %115 = tpu.memref_slice %arg5[%c0_i32_69, %c2_i32_70, %c0_i32_74] : memref<2x8x256xf32, #tpu.memory_space<vmem>> -> memref<1x1x256xf32, #tpu.memory_space<vmem>>
      %116 = tpu.memref_squeeze %115 : memref<1x1x256xf32, #tpu.memory_space<vmem>> -> memref<256xf32, #tpu.memory_space<vmem>>
      %117 = tpu.memref_slice %arg6[%c0_i32_71, %c2_i32_72] : memref<2x8x!tpu.dma_semaphore, #tpu.memory_space<semaphore_mem>> -> memref<1x1x!tpu.dma_semaphore, #tpu.memory_space<semaphore_mem>>
      %118 = tpu.memref_squeeze %117 : memref<1x1x!tpu.dma_semaphore, #tpu.memory_space<semaphore_mem>> -> memref<!tpu.dma_semaphore, #tpu.memory_space<semaphore_mem>>
      tpu.enqueue_dma source(%114 : memref<256xf32, #tpu.memory_space<any>>) target(%116 : memref<256xf32, #tpu.memory_space<vmem>>) target_semaphore(%118 : memref<!tpu.dma_semaphore, #tpu.memory_space<semaphore_mem>>)
      %c3 = arith.constant 3 : index
      %119 = memref.load %arg1[%c3] : memref<32xi32, #tpu.memory_space<smem>>
      %c0_i32_75 = arith.constant 0 : i32
      %c3_i32_76 = arith.constant 3 : i32
      %c0_i32_77 = arith.constant 0 : i32
      %c3_i32_78 = arith.constant 3 : i32
      %c0_i32_79 = arith.constant 0 : i32
      %120 = tpu.memref_slice %arg3[%119, %c0_i32_79] : memref<64x256xf32, #tpu.memory_space<any>> -> memref<1x256xf32, #tpu.memory_space<any>>
      %121 = tpu.memref_squeeze %120 : memref<1x256xf32, #tpu.memory_space<any>> -> memref<256xf32, #tpu.memory_space<any>>
      %c0_i32_80 = arith.constant 0 : i32
      %122 = tpu.memref_slice %arg5[%c0_i32_75, %c3_i32_76, %c0_i32_80] : memref<2x8x256xf32, #tpu.memory_space<vmem>> -> memref<1x1x256xf32, #tpu.memory_space<vmem>>
      %123 = tpu.memref_squeeze %122 : memref<1x1x256xf32, #tpu.memory_space<vmem>> -> memref<256xf32, #tpu.memory_space<vmem>>
      %124 = tpu.memref_slice %arg6[%c0_i32_77, %c3_i32_78] : memref<2x8x!tpu.dma_semaphore, #tpu.memory_space<semaphore_mem>> -> memref<1x1x!tpu.dma_semaphore, #tpu.memory_space<semaphore_mem>>
      %125 = tpu.memref_squeeze %124 : memref<1x1x!tpu.dma_semaphore, #tpu.memory_space<semaphore_mem>> -> memref<!tpu.dma_semaphore, #tpu.memory_space<semaphore_mem>>
      tpu.enqueue_dma source(%121 : memref<256xf32, #tpu.memory_space<any>>) target(%123 : memref<256xf32, #tpu.memory_space<vmem>>) target_semaphore(%125 : memref<!tpu.dma_semaphore, #tpu.memory_space<semaphore_mem>>)
      %c4 = arith.constant 4 : index
      %126 = memref.load %arg1[%c4] : memref<32xi32, #tpu.memory_space<smem>>
      %c0_i32_81 = arith.constant 0 : i32
      %c4_i32_82 = arith.constant 4 : i32
      %c0_i32_83 = arith.constant 0 : i32
      %c4_i32_84 = arith.constant 4 : i32
      %c0_i32_85 = arith.constant 0 : i32
      %127 = tpu.memref_slice %arg3[%126, %c0_i32_85] : memref<64x256xf32, #tpu.memory_space<any>> -> memref<1x256xf32, #tpu.memory_space<any>>
      %128 = tpu.memref_squeeze %127 : memref<1x256xf32, #tpu.memory_space<any>> -> memref<256xf32, #tpu.memory_space<any>>
      %c0_i32_86 = arith.constant 0 : i32
      %129 = tpu.memref_slice %arg5[%c0_i32_81, %c4_i32_82, %c0_i32_86] : memref<2x8x256xf32, #tpu.memory_space<vmem>> -> memref<1x1x256xf32, #tpu.memory_space<vmem>>
      %130 = tpu.memref_squeeze %129 : memref<1x1x256xf32, #tpu.memory_space<vmem>> -> memref<256xf32, #tpu.memory_space<vmem>>
      %131 = tpu.memref_slice %arg6[%c0_i32_83, %c4_i32_84] : memref<2x8x!tpu.dma_semaphore, #tpu.memory_space<semaphore_mem>> -> memref<1x1x!tpu.dma_semaphore, #tpu.memory_space<semaphore_mem>>
      %132 = tpu.memref_squeeze %131 : memref<1x1x!tpu.dma_semaphore, #tpu.memory_space<semaphore_mem>> -> memref<!tpu.dma_semaphore, #tpu.memory_space<semaphore_mem>>
      tpu.enqueue_dma source(%128 : memref<256xf32, #tpu.memory_space<any>>) target(%130 : memref<256xf32, #tpu.memory_space<vmem>>) target_semaphore(%132 : memref<!tpu.dma_semaphore, #tpu.memory_space<semaphore_mem>>)
      %c5 = arith.constant 5 : index
      %133 = memref.load %arg1[%c5] : memref<32xi32, #tpu.memory_space<smem>>
      %c0_i32_87 = arith.constant 0 : i32
      %c5_i32_88 = arith.constant 5 : i32
      %c0_i32_89 = arith.constant 0 : i32
      %c5_i32_90 = arith.constant 5 : i32
      %c0_i32_91 = arith.constant 0 : i32
      %134 = tpu.memref_slice %arg3[%133, %c0_i32_91] : memref<64x256xf32, #tpu.memory_space<any>> -> memref<1x256xf32, #tpu.memory_space<any>>
      %135 = tpu.memref_squeeze %134 : memref<1x256xf32, #tpu.memory_space<any>> -> memref<256xf32, #tpu.memory_space<any>>
      %c0_i32_92 = arith.constant 0 : i32
      %136 = tpu.memref_slice %arg5[%c0_i32_87, %c5_i32_88, %c0_i32_92] : memref<2x8x256xf32, #tpu.memory_space<vmem>> -> memref<1x1x256xf32, #tpu.memory_space<vmem>>
      %137 = tpu.memref_squeeze %136 : memref<1x1x256xf32, #tpu.memory_space<vmem>> -> memref<256xf32, #tpu.memory_space<vmem>>
      %138 = tpu.memref_slice %arg6[%c0_i32_89, %c5_i32_90] : memref<2x8x!tpu.dma_semaphore, #tpu.memory_space<semaphore_mem>> -> memref<1x1x!tpu.dma_semaphore, #tpu.memory_space<semaphore_mem>>
      %139 = tpu.memref_squeeze %138 : memref<1x1x!tpu.dma_semaphore, #tpu.memory_space<semaphore_mem>> -> memref<!tpu.dma_semaphore, #tpu.memory_space<semaphore_mem>>
      tpu.enqueue_dma source(%135 : memref<256xf32, #tpu.memory_space<any>>) target(%137 : memref<256xf32, #tpu.memory_space<vmem>>) target_semaphore(%139 : memref<!tpu.dma_semaphore, #tpu.memory_space<semaphore_mem>>)
      %c6 = arith.constant 6 : index
      %140 = memref.load %arg1[%c6] : memref<32xi32, #tpu.memory_space<smem>>
      %c0_i32_93 = arith.constant 0 : i32
      %c6_i32_94 = arith.constant 6 : i32
      %c0_i32_95 = arith.constant 0 : i32
      %c6_i32_96 = arith.constant 6 : i32
      %c0_i32_97 = arith.constant 0 : i32
      %141 = tpu.memref_slice %arg3[%140, %c0_i32_97] : memref<64x256xf32, #tpu.memory_space<any>> -> memref<1x256xf32, #tpu.memory_space<any>>
      %142 = tpu.memref_squeeze %141 : memref<1x256xf32, #tpu.memory_space<any>> -> memref<256xf32, #tpu.memory_space<any>>
      %c0_i32_98 = arith.constant 0 : i32
      %143 = tpu.memref_slice %arg5[%c0_i32_93, %c6_i32_94, %c0_i32_98] : memref<2x8x256xf32, #tpu.memory_space<vmem>> -> memref<1x1x256xf32, #tpu.memory_space<vmem>>
      %144 = tpu.memref_squeeze %143 : memref<1x1x256xf32, #tpu.memory_space<vmem>> -> memref<256xf32, #tpu.memory_space<vmem>>
      %145 = tpu.memref_slice %arg6[%c0_i32_95, %c6_i32_96] : memref<2x8x!tpu.dma_semaphore, #tpu.memory_space<semaphore_mem>> -> memref<1x1x!tpu.dma_semaphore, #tpu.memory_space<semaphore_mem>>
      %146 = tpu.memref_squeeze %145 : memref<1x1x!tpu.dma_semaphore, #tpu.memory_space<semaphore_mem>> -> memref<!tpu.dma_semaphore, #tpu.memory_space<semaphore_mem>>
      tpu.enqueue_dma source(%142 : memref<256xf32, #tpu.memory_space<any>>) target(%144 : memref<256xf32, #tpu.memory_space<vmem>>) target_semaphore(%146 : memref<!tpu.dma_semaphore, #tpu.memory_space<semaphore_mem>>)
      %c7 = arith.constant 7 : index
      %147 = memref.load %arg1[%c7] : memref<32xi32, #tpu.memory_space<smem>>
      %c0_i32_99 = arith.constant 0 : i32
      %c7_i32_100 = arith.constant 7 : i32
      %c0_i32_101 = arith.constant 0 : i32
      %c7_i32_102 = arith.constant 7 : i32
      %c0_i32_103 = arith.constant 0 : i32
      %148 = tpu.memref_slice %arg3[%147, %c0_i32_103] : memref<64x256xf32, #tpu.memory_space<any>> -> memref<1x256xf32, #tpu.memory_space<any>>
      %149 = tpu.memref_squeeze %148 : memref<1x256xf32, #tpu.memory_space<any>> -> memref<256xf32, #tpu.memory_space<any>>
      %c0_i32_104 = arith.constant 0 : i32
      %150 = tpu.memref_slice %arg5[%c0_i32_99, %c7_i32_100, %c0_i32_104] : memref<2x8x256xf32, #tpu.memory_space<vmem>> -> memref<1x1x256xf32, #tpu.memory_space<vmem>>
      %151 = tpu.memref_squeeze %150 : memref<1x1x256xf32, #tpu.memory_space<vmem>> -> memref<256xf32, #tpu.memory_space<vmem>>
      %152 = tpu.memref_slice %arg6[%c0_i32_101, %c7_i32_102] : memref<2x8x!tpu.dma_semaphore, #tpu.memory_space<semaphore_mem>> -> memref<1x1x!tpu.dma_semaphore, #tpu.memory_space<semaphore_mem>>
      %153 = tpu.memref_squeeze %152 : memref<1x1x!tpu.dma_semaphore, #tpu.memory_space<semaphore_mem>> -> memref<!tpu.dma_semaphore, #tpu.memory_space<semaphore_mem>>
      tpu.enqueue_dma source(%149 : memref<256xf32, #tpu.memory_space<any>>) target(%151 : memref<256xf32, #tpu.memory_space<vmem>>) target_semaphore(%153 : memref<!tpu.dma_semaphore, #tpu.memory_space<semaphore_mem>>)
    } else {
    }
    %c1_i32_1 = arith.constant 1 : i32
    %4 = arith.addi %arg0, %c1_i32_1 : i32
    %c4_i32 = arith.constant 4 : i32
    %5 = arith.cmpi slt, %4, %c4_i32 : i32
    %6 = arith.extui %5 : i1 to i32
    %c0_i32_2 = arith.constant 0 : i32
    %7 = arith.cmpi ne, %6, %c0_i32_2 : i32
    scf.if %7 {
      %c1_i32_56 = arith.constant 1 : i32
      %98 = arith.addi %arg0, %c1_i32_56 : i32
      %c1_i32_57 = arith.constant 1 : i32
      %99 = arith.subi %c1_i32_57, %0 : i32
      %c8_i32_58 = arith.constant 8 : i32
      %100 = arith.muli %98, %c8_i32_58 : i32
      %c0_i32_59 = arith.constant 0 : i32
      %101 = arith.addi %100, %c0_i32_59 : i32
      %102 = arith.index_cast %101 : i32 to index
      %103 = memref.load %arg1[%102] : memref<32xi32, #tpu.memory_space<smem>>
      %c0_i32_60 = arith.constant 0 : i32
      %c0_i32_61 = arith.constant 0 : i32
      %c0_i32_62 = arith.constant 0 : i32
      %104 = tpu.memref_slice %arg3[%103, %c0_i32_62] : memref<64x256xf32, #tpu.memory_space<any>> -> memref<1x256xf32, #tpu.memory_space<any>>
      %105 = tpu.memref_squeeze %104 : memref<1x256xf32, #tpu.memory_space<any>> -> memref<256xf32, #tpu.memory_space<any>>
      %c0_i32_63 = arith.constant 0 : i32
      %106 = tpu.memref_slice %arg5[%99, %c0_i32_60, %c0_i32_63] : memref<2x8x256xf32, #tpu.memory_space<vmem>> -> memref<1x1x256xf32, #tpu.memory_space<vmem>>
      %107 = tpu.memref_squeeze %106 : memref<1x1x256xf32, #tpu.memory_space<vmem>> -> memref<256xf32, #tpu.memory_space<vmem>>
      %108 = tpu.memref_slice %arg6[%99, %c0_i32_61] : memref<2x8x!tpu.dma_semaphore, #tpu.memory_space<semaphore_mem>> -> memref<1x1x!tpu.dma_semaphore, #tpu.memory_space<semaphore_mem>>
      %109 = tpu.memref_squeeze %108 : memref<1x1x!tpu.dma_semaphore, #tpu.memory_space<semaphore_mem>> -> memref<!tpu.dma_semaphore, #tpu.memory_space<semaphore_mem>>
      tpu.enqueue_dma source(%105 : memref<256xf32, #tpu.memory_space<any>>) target(%107 : memref<256xf32, #tpu.memory_space<vmem>>) target_semaphore(%109 : memref<!tpu.dma_semaphore, #tpu.memory_space<semaphore_mem>>)
      %c1_i32_64 = arith.constant 1 : i32
      %110 = arith.addi %100, %c1_i32_64 : i32
      %111 = arith.index_cast %110 : i32 to index
      %112 = memref.load %arg1[%111] : memref<32xi32, #tpu.memory_space<smem>>
      %c1_i32_65 = arith.constant 1 : i32
      %c1_i32_66 = arith.constant 1 : i32
      %c0_i32_67 = arith.constant 0 : i32
      %113 = tpu.memref_slice %arg3[%112, %c0_i32_67] : memref<64x256xf32, #tpu.memory_space<any>> -> memref<1x256xf32, #tpu.memory_space<any>>
      %114 = tpu.memref_squeeze %113 : memref<1x256xf32, #tpu.memory_space<any>> -> memref<256xf32, #tpu.memory_space<any>>
      %c0_i32_68 = arith.constant 0 : i32
      %115 = tpu.memref_slice %arg5[%99, %c1_i32_65, %c0_i32_68] : memref<2x8x256xf32, #tpu.memory_space<vmem>> -> memref<1x1x256xf32, #tpu.memory_space<vmem>>
      %116 = tpu.memref_squeeze %115 : memref<1x1x256xf32, #tpu.memory_space<vmem>> -> memref<256xf32, #tpu.memory_space<vmem>>
      %117 = tpu.memref_slice %arg6[%99, %c1_i32_66] : memref<2x8x!tpu.dma_semaphore, #tpu.memory_space<semaphore_mem>> -> memref<1x1x!tpu.dma_semaphore, #tpu.memory_space<semaphore_mem>>
      %118 = tpu.memref_squeeze %117 : memref<1x1x!tpu.dma_semaphore, #tpu.memory_space<semaphore_mem>> -> memref<!tpu.dma_semaphore, #tpu.memory_space<semaphore_mem>>
      tpu.enqueue_dma source(%114 : memref<256xf32, #tpu.memory_space<any>>) target(%116 : memref<256xf32, #tpu.memory_space<vmem>>) target_semaphore(%118 : memref<!tpu.dma_semaphore, #tpu.memory_space<semaphore_mem>>)
      %c2_i32_69 = arith.constant 2 : i32
      %119 = arith.addi %100, %c2_i32_69 : i32
      %120 = arith.index_cast %119 : i32 to index
      %121 = memref.load %arg1[%120] : memref<32xi32, #tpu.memory_space<smem>>
      %c2_i32_70 = arith.constant 2 : i32
      %c2_i32_71 = arith.constant 2 : i32
      %c0_i32_72 = arith.constant 0 : i32
      %122 = tpu.memref_slice %arg3[%121, %c0_i32_72] : memref<64x256xf32, #tpu.memory_space<any>> -> memref<1x256xf32, #tpu.memory_space<any>>
      %123 = tpu.memref_squeeze %122 : memref<1x256xf32, #tpu.memory_space<any>> -> memref<256xf32, #tpu.memory_space<any>>
      %c0_i32_73 = arith.constant 0 : i32
      %124 = tpu.memref_slice %arg5[%99, %c2_i32_70, %c0_i32_73] : memref<2x8x256xf32, #tpu.memory_space<vmem>> -> memref<1x1x256xf32, #tpu.memory_space<vmem>>
      %125 = tpu.memref_squeeze %124 : memref<1x1x256xf32, #tpu.memory_space<vmem>> -> memref<256xf32, #tpu.memory_space<vmem>>
      %126 = tpu.memref_slice %arg6[%99, %c2_i32_71] : memref<2x8x!tpu.dma_semaphore, #tpu.memory_space<semaphore_mem>> -> memref<1x1x!tpu.dma_semaphore, #tpu.memory_space<semaphore_mem>>
      %127 = tpu.memref_squeeze %126 : memref<1x1x!tpu.dma_semaphore, #tpu.memory_space<semaphore_mem>> -> memref<!tpu.dma_semaphore, #tpu.memory_space<semaphore_mem>>
      tpu.enqueue_dma source(%123 : memref<256xf32, #tpu.memory_space<any>>) target(%125 : memref<256xf32, #tpu.memory_space<vmem>>) target_semaphore(%127 : memref<!tpu.dma_semaphore, #tpu.memory_space<semaphore_mem>>)
      %c3_i32_74 = arith.constant 3 : i32
      %128 = arith.addi %100, %c3_i32_74 : i32
      %129 = arith.index_cast %128 : i32 to index
      %130 = memref.load %arg1[%129] : memref<32xi32, #tpu.memory_space<smem>>
      %c3_i32_75 = arith.constant 3 : i32
      %c3_i32_76 = arith.constant 3 : i32
      %c0_i32_77 = arith.constant 0 : i32
      %131 = tpu.memref_slice %arg3[%130, %c0_i32_77] : memref<64x256xf32, #tpu.memory_space<any>> -> memref<1x256xf32, #tpu.memory_space<any>>
      %132 = tpu.memref_squeeze %131 : memref<1x256xf32, #tpu.memory_space<any>> -> memref<256xf32, #tpu.memory_space<any>>
      %c0_i32_78 = arith.constant 0 : i32
      %133 = tpu.memref_slice %arg5[%99, %c3_i32_75, %c0_i32_78] : memref<2x8x256xf32, #tpu.memory_space<vmem>> -> memref<1x1x256xf32, #tpu.memory_space<vmem>>
      %134 = tpu.memref_squeeze %133 : memref<1x1x256xf32, #tpu.memory_space<vmem>> -> memref<256xf32, #tpu.memory_space<vmem>>
      %135 = tpu.memref_slice %arg6[%99, %c3_i32_76] : memref<2x8x!tpu.dma_semaphore, #tpu.memory_space<semaphore_mem>> -> memref<1x1x!tpu.dma_semaphore, #tpu.memory_space<semaphore_mem>>
      %136 = tpu.memref_squeeze %135 : memref<1x1x!tpu.dma_semaphore, #tpu.memory_space<semaphore_mem>> -> memref<!tpu.dma_semaphore, #tpu.memory_space<semaphore_mem>>
      tpu.enqueue_dma source(%132 : memref<256xf32, #tpu.memory_space<any>>) target(%134 : memref<256xf32, #tpu.memory_space<vmem>>) target_semaphore(%136 : memref<!tpu.dma_semaphore, #tpu.memory_space<semaphore_mem>>)
      %c4_i32_79 = arith.constant 4 : i32
      %137 = arith.addi %100, %c4_i32_79 : i32
      %138 = arith.index_cast %137 : i32 to index
      %139 = memref.load %arg1[%138] : memref<32xi32, #tpu.memory_space<smem>>
      %c4_i32_80 = arith.constant 4 : i32
      %c4_i32_81 = arith.constant 4 : i32
      %c0_i32_82 = arith.constant 0 : i32
      %140 = tpu.memref_slice %arg3[%139, %c0_i32_82] : memref<64x256xf32, #tpu.memory_space<any>> -> memref<1x256xf32, #tpu.memory_space<any>>
      %141 = tpu.memref_squeeze %140 : memref<1x256xf32, #tpu.memory_space<any>> -> memref<256xf32, #tpu.memory_space<any>>
      %c0_i32_83 = arith.constant 0 : i32
      %142 = tpu.memref_slice %arg5[%99, %c4_i32_80, %c0_i32_83] : memref<2x8x256xf32, #tpu.memory_space<vmem>> -> memref<1x1x256xf32, #tpu.memory_space<vmem>>
      %143 = tpu.memref_squeeze %142 : memref<1x1x256xf32, #tpu.memory_space<vmem>> -> memref<256xf32, #tpu.memory_space<vmem>>
      %144 = tpu.memref_slice %arg6[%99, %c4_i32_81] : memref<2x8x!tpu.dma_semaphore, #tpu.memory_space<semaphore_mem>> -> memref<1x1x!tpu.dma_semaphore, #tpu.memory_space<semaphore_mem>>
      %145 = tpu.memref_squeeze %144 : memref<1x1x!tpu.dma_semaphore, #tpu.memory_space<semaphore_mem>> -> memref<!tpu.dma_semaphore, #tpu.memory_space<semaphore_mem>>
      tpu.enqueue_dma source(%141 : memref<256xf32, #tpu.memory_space<any>>) target(%143 : memref<256xf32, #tpu.memory_space<vmem>>) target_semaphore(%145 : memref<!tpu.dma_semaphore, #tpu.memory_space<semaphore_mem>>)
      %c5_i32_84 = arith.constant 5 : i32
      %146 = arith.addi %100, %c5_i32_84 : i32
      %147 = arith.index_cast %146 : i32 to index
      %148 = memref.load %arg1[%147] : memref<32xi32, #tpu.memory_space<smem>>
      %c5_i32_85 = arith.constant 5 : i32
      %c5_i32_86 = arith.constant 5 : i32
      %c0_i32_87 = arith.constant 0 : i32
      %149 = tpu.memref_slice %arg3[%148, %c0_i32_87] : memref<64x256xf32, #tpu.memory_space<any>> -> memref<1x256xf32, #tpu.memory_space<any>>
      %150 = tpu.memref_squeeze %149 : memref<1x256xf32, #tpu.memory_space<any>> -> memref<256xf32, #tpu.memory_space<any>>
      %c0_i32_88 = arith.constant 0 : i32
      %151 = tpu.memref_slice %arg5[%99, %c5_i32_85, %c0_i32_88] : memref<2x8x256xf32, #tpu.memory_space<vmem>> -> memref<1x1x256xf32, #tpu.memory_space<vmem>>
      %152 = tpu.memref_squeeze %151 : memref<1x1x256xf32, #tpu.memory_space<vmem>> -> memref<256xf32, #tpu.memory_space<vmem>>
      %153 = tpu.memref_slice %arg6[%99, %c5_i32_86] : memref<2x8x!tpu.dma_semaphore, #tpu.memory_space<semaphore_mem>> -> memref<1x1x!tpu.dma_semaphore, #tpu.memory_space<semaphore_mem>>
      %154 = tpu.memref_squeeze %153 : memref<1x1x!tpu.dma_semaphore, #tpu.memory_space<semaphore_mem>> -> memref<!tpu.dma_semaphore, #tpu.memory_space<semaphore_mem>>
      tpu.enqueue_dma source(%150 : memref<256xf32, #tpu.memory_space<any>>) target(%152 : memref<256xf32, #tpu.memory_space<vmem>>) target_semaphore(%154 : memref<!tpu.dma_semaphore, #tpu.memory_space<semaphore_mem>>)
      %c6_i32_89 = arith.constant 6 : i32
      %155 = arith.addi %100, %c6_i32_89 : i32
      %156 = arith.index_cast %155 : i32 to index
      %157 = memref.load %arg1[%156] : memref<32xi32, #tpu.memory_space<smem>>
      %c6_i32_90 = arith.constant 6 : i32
      %c6_i32_91 = arith.constant 6 : i32
      %c0_i32_92 = arith.constant 0 : i32
      %158 = tpu.memref_slice %arg3[%157, %c0_i32_92] : memref<64x256xf32, #tpu.memory_space<any>> -> memref<1x256xf32, #tpu.memory_space<any>>
      %159 = tpu.memref_squeeze %158 : memref<1x256xf32, #tpu.memory_space<any>> -> memref<256xf32, #tpu.memory_space<any>>
      %c0_i32_93 = arith.constant 0 : i32
      %160 = tpu.memref_slice %arg5[%99, %c6_i32_90, %c0_i32_93] : memref<2x8x256xf32, #tpu.memory_space<vmem>> -> memref<1x1x256xf32, #tpu.memory_space<vmem>>
      %161 = tpu.memref_squeeze %160 : memref<1x1x256xf32, #tpu.memory_space<vmem>> -> memref<256xf32, #tpu.memory_space<vmem>>
      %162 = tpu.memref_slice %arg6[%99, %c6_i32_91] : memref<2x8x!tpu.dma_semaphore, #tpu.memory_space<semaphore_mem>> -> memref<1x1x!tpu.dma_semaphore, #tpu.memory_space<semaphore_mem>>
      %163 = tpu.memref_squeeze %162 : memref<1x1x!tpu.dma_semaphore, #tpu.memory_space<semaphore_mem>> -> memref<!tpu.dma_semaphore, #tpu.memory_space<semaphore_mem>>
      tpu.enqueue_dma source(%159 : memref<256xf32, #tpu.memory_space<any>>) target(%161 : memref<256xf32, #tpu.memory_space<vmem>>) target_semaphore(%163 : memref<!tpu.dma_semaphore, #tpu.memory_space<semaphore_mem>>)
      %c7_i32_94 = arith.constant 7 : i32
      %164 = arith.addi %100, %c7_i32_94 : i32
      %165 = arith.index_cast %164 : i32 to index
      %166 = memref.load %arg1[%165] : memref<32xi32, #tpu.memory_space<smem>>
      %c7_i32_95 = arith.constant 7 : i32
      %c7_i32_96 = arith.constant 7 : i32
      %c0_i32_97 = arith.constant 0 : i32
      %167 = tpu.memref_slice %arg3[%166, %c0_i32_97] : memref<64x256xf32, #tpu.memory_space<any>> -> memref<1x256xf32, #tpu.memory_space<any>>
      %168 = tpu.memref_squeeze %167 : memref<1x256xf32, #tpu.memory_space<any>> -> memref<256xf32, #tpu.memory_space<any>>
      %c0_i32_98 = arith.constant 0 : i32
      %169 = tpu.memref_slice %arg5[%99, %c7_i32_95, %c0_i32_98] : memref<2x8x256xf32, #tpu.memory_space<vmem>> -> memref<1x1x256xf32, #tpu.memory_space<vmem>>
      %170 = tpu.memref_squeeze %169 : memref<1x1x256xf32, #tpu.memory_space<vmem>> -> memref<256xf32, #tpu.memory_space<vmem>>
      %171 = tpu.memref_slice %arg6[%99, %c7_i32_96] : memref<2x8x!tpu.dma_semaphore, #tpu.memory_space<semaphore_mem>> -> memref<1x1x!tpu.dma_semaphore, #tpu.memory_space<semaphore_mem>>
      %172 = tpu.memref_squeeze %171 : memref<1x1x!tpu.dma_semaphore, #tpu.memory_space<semaphore_mem>> -> memref<!tpu.dma_semaphore, #tpu.memory_space<semaphore_mem>>
      tpu.enqueue_dma source(%168 : memref<256xf32, #tpu.memory_space<any>>) target(%170 : memref<256xf32, #tpu.memory_space<vmem>>) target_semaphore(%172 : memref<!tpu.dma_semaphore, #tpu.memory_space<semaphore_mem>>)
    } else {
    }
    %c0_i32_3 = arith.constant 0 : i32
    %8 = arith.cmpi eq, %arg0, %c0_i32_3 : i32
    %9 = arith.extui %8 : i1 to i32
    %c0_i32_4 = arith.constant 0 : i32
    %10 = arith.cmpi ne, %9, %c0_i32_4 : i32
    scf.if %10 {
      %cst_56 = arith.constant 0.000000e+00 : f32
      %c0_57 = arith.constant 0 : index
      %c0_58 = arith.constant 0 : index
      %98 = memref.load %arg7[%c0_57, %c0_58] : memref<1x1xf32, #tpu.memory_space<smem>>
      memref.store %cst_56, %arg7[%c0_57, %c0_58] : memref<1x1xf32, #tpu.memory_space<smem>>
    } else {
    }
    %c0_i32_5 = arith.constant 0 : i32
    %c0_i32_6 = arith.constant 0 : i32
    %c0_i32_7 = arith.constant 0 : i32
    %c0_i32_8 = arith.constant 0 : i32
    %11 = tpu.memref_slice %arg3[%c0_i32_5, %c0_i32_8] : memref<64x256xf32, #tpu.memory_space<any>> -> memref<1x256xf32, #tpu.memory_space<any>>
    %12 = tpu.memref_squeeze %11 : memref<1x256xf32, #tpu.memory_space<any>> -> memref<256xf32, #tpu.memory_space<any>>
    %c0_i32_9 = arith.constant 0 : i32
    %13 = tpu.memref_slice %arg5[%0, %c0_i32_6, %c0_i32_9] : memref<2x8x256xf32, #tpu.memory_space<vmem>> -> memref<1x1x256xf32, #tpu.memory_space<vmem>>
    %14 = tpu.memref_squeeze %13 : memref<1x1x256xf32, #tpu.memory_space<vmem>> -> memref<256xf32, #tpu.memory_space<vmem>>
    %15 = tpu.memref_slice %arg6[%0, %c0_i32_7] : memref<2x8x!tpu.dma_semaphore, #tpu.memory_space<semaphore_mem>> -> memref<1x1x!tpu.dma_semaphore, #tpu.memory_space<semaphore_mem>>
    %16 = tpu.memref_squeeze %15 : memref<1x1x!tpu.dma_semaphore, #tpu.memory_space<semaphore_mem>> -> memref<!tpu.dma_semaphore, #tpu.memory_space<semaphore_mem>>
    tpu.wait_dma2 semaphore(%16 : memref<!tpu.dma_semaphore, #tpu.memory_space<semaphore_mem>>) src(%12 : memref<256xf32, #tpu.memory_space<any>>) dst(%14 : memref<256xf32, #tpu.memory_space<vmem>>)
    %c0_i32_10 = arith.constant 0 : i32
    %c1_i32_11 = arith.constant 1 : i32
    %c1_i32_12 = arith.constant 1 : i32
    %c0_i32_13 = arith.constant 0 : i32
    %17 = tpu.memref_slice %arg3[%c0_i32_10, %c0_i32_13] : memref<64x256xf32, #tpu.memory_space<any>> -> memref<1x256xf32, #tpu.memory_space<any>>
    %18 = tpu.memref_squeeze %17 : memref<1x256xf32, #tpu.memory_space<any>> -> memref<256xf32, #tpu.memory_space<any>>
    %c0_i32_14 = arith.constant 0 : i32
    %19 = tpu.memref_slice %arg5[%0, %c1_i32_11, %c0_i32_14] : memref<2x8x256xf32, #tpu.memory_space<vmem>> -> memref<1x1x256xf32, #tpu.memory_space<vmem>>
    %20 = tpu.memref_squeeze %19 : memref<1x1x256xf32, #tpu.memory_space<vmem>> -> memref<256xf32, #tpu.memory_space<vmem>>
    %21 = tpu.memref_slice %arg6[%0, %c1_i32_12] : memref<2x8x!tpu.dma_semaphore, #tpu.memory_space<semaphore_mem>> -> memref<1x1x!tpu.dma_semaphore, #tpu.memory_space<semaphore_mem>>
    %22 = tpu.memref_squeeze %21 : memref<1x1x!tpu.dma_semaphore, #tpu.memory_space<semaphore_mem>> -> memref<!tpu.dma_semaphore, #tpu.memory_space<semaphore_mem>>
    tpu.wait_dma2 semaphore(%22 : memref<!tpu.dma_semaphore, #tpu.memory_space<semaphore_mem>>) src(%18 : memref<256xf32, #tpu.memory_space<any>>) dst(%20 : memref<256xf32, #tpu.memory_space<vmem>>)
    %c0_i32_15 = arith.constant 0 : i32
    %c2_i32 = arith.constant 2 : i32
    %c2_i32_16 = arith.constant 2 : i32
    %c0_i32_17 = arith.constant 0 : i32
    %23 = tpu.memref_slice %arg3[%c0_i32_15, %c0_i32_17] : memref<64x256xf32, #tpu.memory_space<any>> -> memref<1x256xf32, #tpu.memory_space<any>>
    %24 = tpu.memref_squeeze %23 : memref<1x256xf32, #tpu.memory_space<any>> -> memref<256xf32, #tpu.memory_space<any>>
    %c0_i32_18 = arith.constant 0 : i32
    %25 = tpu.memref_slice %arg5[%0, %c2_i32, %c0_i32_18] : memref<2x8x256xf32, #tpu.memory_space<vmem>> -> memref<1x1x256xf32, #tpu.memory_space<vmem>>
    %26 = tpu.memref_squeeze %25 : memref<1x1x256xf32, #tpu.memory_space<vmem>> -> memref<256xf32, #tpu.memory_space<vmem>>
    %27 = tpu.memref_slice %arg6[%0, %c2_i32_16] : memref<2x8x!tpu.dma_semaphore, #tpu.memory_space<semaphore_mem>> -> memref<1x1x!tpu.dma_semaphore, #tpu.memory_space<semaphore_mem>>
    %28 = tpu.memref_squeeze %27 : memref<1x1x!tpu.dma_semaphore, #tpu.memory_space<semaphore_mem>> -> memref<!tpu.dma_semaphore, #tpu.memory_space<semaphore_mem>>
    tpu.wait_dma2 semaphore(%28 : memref<!tpu.dma_semaphore, #tpu.memory_space<semaphore_mem>>) src(%24 : memref<256xf32, #tpu.memory_space<any>>) dst(%26 : memref<256xf32, #tpu.memory_space<vmem>>)
    %c0_i32_19 = arith.constant 0 : i32
    %c3_i32 = arith.constant 3 : i32
    %c3_i32_20 = arith.constant 3 : i32
    %c0_i32_21 = arith.constant 0 : i32
    %29 = tpu.memref_slice %arg3[%c0_i32_19, %c0_i32_21] : memref<64x256xf32, #tpu.memory_space<any>> -> memref<1x256xf32, #tpu.memory_space<any>>
    %30 = tpu.memref_squeeze %29 : memref<1x256xf32, #tpu.memory_space<any>> -> memref<256xf32, #tpu.memory_space<any>>
    %c0_i32_22 = arith.constant 0 : i32
    %31 = tpu.memref_slice %arg5[%0, %c3_i32, %c0_i32_22] : memref<2x8x256xf32, #tpu.memory_space<vmem>> -> memref<1x1x256xf32, #tpu.memory_space<vmem>>
    %32 = tpu.memref_squeeze %31 : memref<1x1x256xf32, #tpu.memory_space<vmem>> -> memref<256xf32, #tpu.memory_space<vmem>>
    %33 = tpu.memref_slice %arg6[%0, %c3_i32_20] : memref<2x8x!tpu.dma_semaphore, #tpu.memory_space<semaphore_mem>> -> memref<1x1x!tpu.dma_semaphore, #tpu.memory_space<semaphore_mem>>
    %34 = tpu.memref_squeeze %33 : memref<1x1x!tpu.dma_semaphore, #tpu.memory_space<semaphore_mem>> -> memref<!tpu.dma_semaphore, #tpu.memory_space<semaphore_mem>>
    tpu.wait_dma2 semaphore(%34 : memref<!tpu.dma_semaphore, #tpu.memory_space<semaphore_mem>>) src(%30 : memref<256xf32, #tpu.memory_space<any>>) dst(%32 : memref<256xf32, #tpu.memory_space<vmem>>)
    %c0_i32_23 = arith.constant 0 : i32
    %c4_i32_24 = arith.constant 4 : i32
    %c4_i32_25 = arith.constant 4 : i32
    %c0_i32_26 = arith.constant 0 : i32
    %35 = tpu.memref_slice %arg3[%c0_i32_23, %c0_i32_26] : memref<64x256xf32, #tpu.memory_space<any>> -> memref<1x256xf32, #tpu.memory_space<any>>
    %36 = tpu.memref_squeeze %35 : memref<1x256xf32, #tpu.memory_space<any>> -> memref<256xf32, #tpu.memory_space<any>>
    %c0_i32_27 = arith.constant 0 : i32
    %37 = tpu.memref_slice %arg5[%0, %c4_i32_24, %c0_i32_27] : memref<2x8x256xf32, #tpu.memory_space<vmem>> -> memref<1x1x256xf32, #tpu.memory_space<vmem>>
    %38 = tpu.memref_squeeze %37 : memref<1x1x256xf32, #tpu.memory_space<vmem>> -> memref<256xf32, #tpu.memory_space<vmem>>
    %39 = tpu.memref_slice %arg6[%0, %c4_i32_25] : memref<2x8x!tpu.dma_semaphore, #tpu.memory_space<semaphore_mem>> -> memref<1x1x!tpu.dma_semaphore, #tpu.memory_space<semaphore_mem>>
    %40 = tpu.memref_squeeze %39 : memref<1x1x!tpu.dma_semaphore, #tpu.memory_space<semaphore_mem>> -> memref<!tpu.dma_semaphore, #tpu.memory_space<semaphore_mem>>
    tpu.wait_dma2 semaphore(%40 : memref<!tpu.dma_semaphore, #tpu.memory_space<semaphore_mem>>) src(%36 : memref<256xf32, #tpu.memory_space<any>>) dst(%38 : memref<256xf32, #tpu.memory_space<vmem>>)
    %c0_i32_28 = arith.constant 0 : i32
    %c5_i32 = arith.constant 5 : i32
    %c5_i32_29 = arith.constant 5 : i32
    %c0_i32_30 = arith.constant 0 : i32
    %41 = tpu.memref_slice %arg3[%c0_i32_28, %c0_i32_30] : memref<64x256xf32, #tpu.memory_space<any>> -> memref<1x256xf32, #tpu.memory_space<any>>
    %42 = tpu.memref_squeeze %41 : memref<1x256xf32, #tpu.memory_space<any>> -> memref<256xf32, #tpu.memory_space<any>>
    %c0_i32_31 = arith.constant 0 : i32
    %43 = tpu.memref_slice %arg5[%0, %c5_i32, %c0_i32_31] : memref<2x8x256xf32, #tpu.memory_space<vmem>> -> memref<1x1x256xf32, #tpu.memory_space<vmem>>
    %44 = tpu.memref_squeeze %43 : memref<1x1x256xf32, #tpu.memory_space<vmem>> -> memref<256xf32, #tpu.memory_space<vmem>>
    %45 = tpu.memref_slice %arg6[%0, %c5_i32_29] : memref<2x8x!tpu.dma_semaphore, #tpu.memory_space<semaphore_mem>> -> memref<1x1x!tpu.dma_semaphore, #tpu.memory_space<semaphore_mem>>
    %46 = tpu.memref_squeeze %45 : memref<1x1x!tpu.dma_semaphore, #tpu.memory_space<semaphore_mem>> -> memref<!tpu.dma_semaphore, #tpu.memory_space<semaphore_mem>>
    tpu.wait_dma2 semaphore(%46 : memref<!tpu.dma_semaphore, #tpu.memory_space<semaphore_mem>>) src(%42 : memref<256xf32, #tpu.memory_space<any>>) dst(%44 : memref<256xf32, #tpu.memory_space<vmem>>)
    %c0_i32_32 = arith.constant 0 : i32
    %c6_i32 = arith.constant 6 : i32
    %c6_i32_33 = arith.constant 6 : i32
    %c0_i32_34 = arith.constant 0 : i32
    %47 = tpu.memref_slice %arg3[%c0_i32_32, %c0_i32_34] : memref<64x256xf32, #tpu.memory_space<any>> -> memref<1x256xf32, #tpu.memory_space<any>>
    %48 = tpu.memref_squeeze %47 : memref<1x256xf32, #tpu.memory_space<any>> -> memref<256xf32, #tpu.memory_space<any>>
    %c0_i32_35 = arith.constant 0 : i32
    %49 = tpu.memref_slice %arg5[%0, %c6_i32, %c0_i32_35] : memref<2x8x256xf32, #tpu.memory_space<vmem>> -> memref<1x1x256xf32, #tpu.memory_space<vmem>>
    %50 = tpu.memref_squeeze %49 : memref<1x1x256xf32, #tpu.memory_space<vmem>> -> memref<256xf32, #tpu.memory_space<vmem>>
    %51 = tpu.memref_slice %arg6[%0, %c6_i32_33] : memref<2x8x!tpu.dma_semaphore, #tpu.memory_space<semaphore_mem>> -> memref<1x1x!tpu.dma_semaphore, #tpu.memory_space<semaphore_mem>>
    %52 = tpu.memref_squeeze %51 : memref<1x1x!tpu.dma_semaphore, #tpu.memory_space<semaphore_mem>> -> memref<!tpu.dma_semaphore, #tpu.memory_space<semaphore_mem>>
    tpu.wait_dma2 semaphore(%52 : memref<!tpu.dma_semaphore, #tpu.memory_space<semaphore_mem>>) src(%48 : memref<256xf32, #tpu.memory_space<any>>) dst(%50 : memref<256xf32, #tpu.memory_space<vmem>>)
    %c0_i32_36 = arith.constant 0 : i32
    %c7_i32 = arith.constant 7 : i32
    %c7_i32_37 = arith.constant 7 : i32
    %c0_i32_38 = arith.constant 0 : i32
    %53 = tpu.memref_slice %arg3[%c0_i32_36, %c0_i32_38] : memref<64x256xf32, #tpu.memory_space<any>> -> memref<1x256xf32, #tpu.memory_space<any>>
    %54 = tpu.memref_squeeze %53 : memref<1x256xf32, #tpu.memory_space<any>> -> memref<256xf32, #tpu.memory_space<any>>
    %c0_i32_39 = arith.constant 0 : i32
    %55 = tpu.memref_slice %arg5[%0, %c7_i32, %c0_i32_39] : memref<2x8x256xf32, #tpu.memory_space<vmem>> -> memref<1x1x256xf32, #tpu.memory_space<vmem>>
    %56 = tpu.memref_squeeze %55 : memref<1x1x256xf32, #tpu.memory_space<vmem>> -> memref<256xf32, #tpu.memory_space<vmem>>
    %57 = tpu.memref_slice %arg6[%0, %c7_i32_37] : memref<2x8x!tpu.dma_semaphore, #tpu.memory_space<semaphore_mem>> -> memref<1x1x!tpu.dma_semaphore, #tpu.memory_space<semaphore_mem>>
    %58 = tpu.memref_squeeze %57 : memref<1x1x!tpu.dma_semaphore, #tpu.memory_space<semaphore_mem>> -> memref<!tpu.dma_semaphore, #tpu.memory_space<semaphore_mem>>
    tpu.wait_dma2 semaphore(%58 : memref<!tpu.dma_semaphore, #tpu.memory_space<semaphore_mem>>) src(%54 : memref<256xf32, #tpu.memory_space<any>>) dst(%56 : memref<256xf32, #tpu.memory_space<vmem>>)
    %c0 = arith.constant 0 : index
    %c0_40 = arith.constant 0 : index
    %59 = vector.load %arg2[%c0, %c0_40] : memref<8x256xf32, #tpu.memory_space<vmem>>, vector<8x256xf32>
    %60 = arith.index_cast %0 : i32 to index
    %c0_41 = arith.constant 0 : index
    %c0_42 = arith.constant 0 : index
    %61 = vector.load %arg5[%60, %c0_41, %c0_42] : memref<2x8x256xf32, #tpu.memory_space<vmem>>, vector<1x8x256xf32>
    %62 = vector.shape_cast %61 : vector<1x8x256xf32> to vector<8x256xf32>
    %63 = arith.mulf %59, %59 : vector<8x256xf32>
    %cst = arith.constant dense<0.000000e+00> : vector<8xf32>
    %64 = vector.multi_reduction <add>, %63, %cst [1] : vector<8x256xf32> to vector<8xf32>
    %65 = vector.shape_cast %64 : vector<8xf32> to vector<8x1xf32>
    %66 = arith.mulf %62, %62 : vector<8x256xf32>
    %cst_43 = arith.constant dense<0.000000e+00> : vector<8xf32>
    %67 = vector.multi_reduction <add>, %66, %cst_43 [1] : vector<8x256xf32> to vector<8xf32>
    %68 = vector.shape_cast %67 : vector<8xf32> to vector<8x1xf32>
    %69 = arith.mulf %59, %62 : vector<8x256xf32>
    %cst_44 = arith.constant dense<0.000000e+00> : vector<8xf32>
    %70 = vector.multi_reduction <add>, %69, %cst_44 [1] : vector<8x256xf32> to vector<8xf32>
    %71 = vector.shape_cast %70 : vector<8xf32> to vector<8x1xf32>
    %72 = arith.addf %65, %68 : vector<8x1xf32>
    %cst_45 = arith.constant 2.000000e+00 : f32
    %73 = vector.broadcast %cst_45 : f32 to vector<8x1xf32>
    %74 = arith.mulf %73, %71 : vector<8x1xf32>
    %75 = arith.subf %72, %74 : vector<8x1xf32>
    %cst_46 = arith.constant 9.99999996E-13 : f32
    %cst_47 = arith.constant 9.99999995E+11 : f32
    %76 = vector.broadcast %cst_46 : f32 to vector<8x1xf32>
    %77 = arith.maximumf %76, %75 : vector<8x1xf32>
    %78 = vector.broadcast %cst_47 : f32 to vector<8x1xf32>
    %79 = arith.minimumf %78, %77 : vector<8x1xf32>
    %c8_i32 = arith.constant 8 : i32
    %80 = arith.muli %arg0, %c8_i32 : i32
    %81 = tpu.iota {dimensions = array<i32: 0>} : vector<8x1xi32>
    %82 = vector.broadcast %80 : i32 to vector<8x1xi32>
    %83 = arith.addi %82, %81 : vector<8x1xi32>
    %c32_i32 = arith.constant 32 : i32
    %84 = vector.broadcast %c32_i32 : i32 to vector<8x1xi32>
    %85 = arith.cmpi slt, %83, %84 : vector<8x1xi32>
    %cst_48 = arith.constant 0.000000e+00 : f32
    %86 = vector.broadcast %cst_48 : f32 to vector<8x1xf32>
    %87 = arith.select %85, %79, %86 : vector<8x1xi1>, vector<8x1xf32>
    %c0_49 = arith.constant 0 : index
    %c0_50 = arith.constant 0 : index
    %88 = memref.load %arg7[%c0_49, %c0_50] : memref<1x1xf32, #tpu.memory_space<smem>>
    %89 = vector.shape_cast %87 : vector<8x1xf32> to vector<1x8x1xf32>
    %cst_51 = arith.constant dense<0.000000e+00> : vector<1xf32>
    %90 = vector.multi_reduction <add>, %89, %cst_51 [1, 2] : vector<1x8x1xf32> to vector<1xf32>
    %91 = vector.shape_cast %90 : vector<1xf32> to vector<1x1x1xf32>
    %92 = vector.extract %91[0, 0, 0] : f32 from vector<1x1x1xf32>
    %93 = arith.addf %88, %92 : f32
    %c0_52 = arith.constant 0 : index
    %c0_53 = arith.constant 0 : index
    %94 = memref.load %arg7[%c0_52, %c0_53] : memref<1x1xf32, #tpu.memory_space<smem>>
    memref.store %93, %arg7[%c0_52, %c0_53] : memref<1x1xf32, #tpu.memory_space<smem>>
    %c3_i32_54 = arith.constant 3 : i32
    %95 = arith.cmpi eq, %arg0, %c3_i32_54 : i32
    %96 = arith.extui %95 : i1 to i32
    %c0_i32_55 = arith.constant 0 : i32
    %97 = arith.cmpi ne, %96, %c0_i32_55 : i32
    scf.if %97 {
      %c0_56 = arith.constant 0 : index
      %c0_57 = arith.constant 0 : index
      %98 = memref.load %arg7[%c0_56, %c0_57] : memref<1x1xf32, #tpu.memory_space<smem>>
      %c0_58 = arith.constant 0 : index
      %c0_59 = arith.constant 0 : index
      %99 = memref.load %arg4[%c0_58, %c0_59] : memref<1x1xf32, #tpu.memory_space<smem>>
      memref.store %98, %arg4[%c0_58, %c0_59] : memref<1x1xf32, #tpu.memory_space<smem>>
    } else {
    }
    return
  }
  func.func @transform_0(%arg0: i32, %arg1: memref<32xi32, #tpu.memory_space<smem>>) -> (i32, i32) {
    %c0_i32 = arith.constant 0 : i32
    %c0_i32_0 = arith.constant 0 : i32
    return %arg0, %c0_i32 : i32, i32
  }
  func.func @transform_2(%arg0: i32, %arg1: memref<32xi32, #tpu.memory_space<smem>>) -> (i32, i32) {
    %c0_i32 = arith.constant 0 : i32
    %c0_i32_0 = arith.constant 0 : i32
    %c0_i32_1 = arith.constant 0 : i32
    return %c0_i32, %c0_i32_0 : i32, i32
  }
}

</mosaic_0001>

<bundles_post_ra>
// kernel: tpu_custom_call.1
= control target key start
LH: loop header
LB: loop body
LE: loop exit
PB: predicated region body
PF: predicated region fallthrough
CT: control target
= control target key end

     0   :  { %s1504_s12 = smov [#allocation6]   ;;  %s2177_s0 = inlined_call_operand.hbm [shape: s32[32], index: 0, kind: input, shape index: {}]   ;;  %s2178_s1 = inlined_call_operand.hbm [shape: f32[32,256], index: 1, kind: input, shape index: {}]   ;;  %s2179_s2 = inlined_call_operand.hbm [shape: f32[64,256], index: 2, kind: input, shape index: {}]   ;;  %s2180_s3 = inlined_call_operand.hbm [shape: f32[1,1], index: 3, kind: output, shape index: {}]  }
   0x1   :  { %2198 = sst [smem:[#allocation53_spill]] %s2178_s1 }
   0x2   :  { %2199 = sst [smem:[#allocation54_spill]] %s2180_s3 }
   0x3   :  { %9 = dma.hbm_to_smem %s2177_s0, 16, %s1504_s12, [#allocation5] }
   0x4   :  { %1462 = dma.done.wait [#allocation5], 16 }
   0x5   :  { %1463 = vsyncadd [#allocation5], 4294967280 }
   0x6   :  { %11 = sfence }
   0x7   :  { %12 = vsyncpa [#allocation8], 0 }
   0x8   :  { %14 = vsyncpa [#allocation8 + $0x1], 0 }
   0x9   :  { %15 = vsyncpa [#allocation9], 0  ;;  %s1541_s15 = smov 0   ;;  %s1543_s16 = smov 0  }
   0xa   :  { %s1545_s17 = smov 0   ;;  %s1547_s18 = smov 0  }
   0xb LB: > { %2200 = sst [smem:[#allocation46_spill]] %s1494_s16  ;;  %s1560_s0 = sadd.s32 4294967295, %s1502_s18   ;;  %s1502_s18 = sphi %s1547_s18, %s2257_s18   ;;  %s1498_s17 = sphi %s1545_s17, %s2260_s17   ;;  %s1494_s16 = sphi %s1543_s16, %s2259_s16   ;;  %s1490_s15 = sphi %s1541_s15, %s2258_s15  }
   0xc   : > { %2201 = sst [smem:[#allocation47_spill]] %s1498_s17  ;;  %s1563_s19 = sadd.s32 1, %s1502_s18  }
   0xd   : > { %2202 = sst [smem:[#allocation48_spill]] %s1560_s0  ;;  %s25_s20 = ssub.s32 %s1502_s18, %s1563_s19 }
   0xe   : > { %2203 = sst [smem:[#allocation49_spill]] %s1563_s19  ;;  %s28_s21 = sadd.s32 1, %s1498_s17 }
   0xf   : > { %p26_p0 = scmp.eq.s32.totalorder %s25_s20, 0  ;;  %p35_p1 = scmp.ne.s32.totalorder %s1498_s17, %s1494_s16 }
  0x10   : > { %p36_p2 = scmp.eq.s32.totalorder %s1502_s18, 0  ;;  %p41_p3 = scmp.ne.s32.totalorder %s1494_s16, %s1490_s15 }
  0x11   : > { %s1573_s22 = scalar_select %p26_p0, %s1498_s17, %s28_s21  }
  0x12   : > { %p37_p4 = por %p36_p2, %p35_p1  ;;  %p2181_p5 = scmp.eq.s32.totalorder %s1560_s0, 0 }
  0x13   : > { %2204 = sst [smem:[#allocation50_spill]] %s1573_s22  ;;  %p932_p6 = scmp.lt.s32.totalorder %s1502_s18, 4 }
  0x14   : > { %p1579_p7 = por %p2181_p5, %p41_p3  ;;  %s86_s24 = sand.u32 1, %s1498_s17  }
  0x15   : > { %s782_s25 = sshll.u32 %s86_s24, 4  ;;  %s878_s26 = sshll.u32 %s1502_s18, 8 }
  0x16   : > { %s2205_s23 = scalar_select %p1579_p7, 1, 0 }
  0x17   : > { %s2206_s1 = sld [smem:[#allocation53_spill]]  ;;  %s90_s30 = scalar_lea.vmem [#allocation7], %s782_s25 }
  0x18   : > { %s98_s4 = sshll.u32 %s90_s30, 4  ;;  %p1592_p8 = pnand %p932_p6, %p37_p4  ;;  %s1590_s4 = int_to_ptr.vmem [resolvable:$true] %s98_s4 }
  0x19   : > { %s87_s6 = scalar_lea.sflag [#allocation8], %s86_s24 }
  0x1a   : > { %p994_p12 = pneg %p1592_p8 }
  0x1d   : > { %s1588_s29 = scalar_lea.hbm %s2206_s1, %s878_s26  ;;  %s997_s10 = scalar_lea.hbm %s2206_s1, 1024 }
  0x1e   : > { %s992_s7 = scalar_lea.hbm %s1588_s29, 256  ;;  %p998_p1 = scmp.lt.s32.totalorder %s1588_s29, %s2206_s1 }
  0x1f   : > { %p993_p11 = scmp.ne.s32.totalorder %s1588_s29, %s992_s7  ;;  %p999_p2 = scmp.lt.s32.totalorder %s997_s10, %s992_s7 }
  0x21   : > { %p995_p13 = pnand %p994_p12, %p993_p11  ;;  %p1000_p3 = por %p999_p2, %p998_p1 }
  0x23   : > { %p996_p0 = pneg %p995_p13 }
  0x25   : > { %p1001_p4 = pnand %p1000_p3, %p996_p0 }
  0x27   : > { %1004 = shalt.err (!%p1001_p4)
}
  0x28   : > { %s1005_s13 = scalar_lea.vmem %s1590_s4, 256  ;;  %s1505_s14 = smov [#allocation7]  }
  0x29   : > { %p1006_p6 = scmp.ne.s32.totalorder %s1590_s4, %s1005_s13  ;;  %s1010_s15 = sshll.u32 %s1505_s14, 4  ;;  %s1011_s15 = int_to_ptr.vmem [resolvable:$false] %s1010_s15 }
  0x2a   : > { %s1012_s20 = scalar_lea.vmem %s1011_s15, 512  ;;  %p1013_p13 = scmp.lt.s32.totalorder %s1590_s4, %s1011_s15 }
  0x2b   : > { %p1008_p5 = pnand %p1006_p6, %p994_p12  ;;  %p1014_p9 = scmp.lt.s32.totalorder %s1012_s20, %s1005_s13 }
  0x2d   : > { %p1009_p11 = pneg %p1008_p5  ;;  %p1015_p10 = por %p1014_p9, %p1013_p13 }
  0x2f   : > { %p1016_p7 = pnand %p1015_p10, %p1009_p11 }
  0x31   : > { %1019 = shalt.err (!%p1016_p7)
}
  0x32   : > { %931 = dma.hbm_to_vmem [thread:$0]  (!%p1592_p8), %s1588_s29, 256, %s1590_s4, %s87_s6  }
  0x33   : > { %p2208_p0 = scmp.lt.s32.totalorder %s1502_s18, 5  ;;  %p2209_p1 = scmp.ge.s32.totalorder %s1502_s18, 1 }
  0x35   : > { %p104_p12 = pnand %p2209_p1, %p2208_p0 }
  0x37   : > { %107 = sbr.rel (%p104_p12) target bundleno = 917 (0x395), region = 24 }
  0x3c   : > { %s109_s21 = sand.u32 1, %s1494_s16   ;;  %p2211_p5 = scmp.ne.s32.totalorder %s2205_s23, 0 }
  0x3d   : > { %s1621_s24 = sshll.u32 %s109_s21, 4  ;;  %s110_s25 = scalar_lea.sflag [#allocation8], %s109_s21 }
  0x3e   : > { %2210 = sst [smem:[#allocation51_spill]] %s1621_s24 }
  0x3f   : > { %1465 = dma.done.wait (%p2211_p5), %s110_s25, 256  }
  0x40   : > { %1467 = vsyncadd (%p2211_p5), %s110_s25, 4294967040  ;;  %s1506_s27 = smov 0.0   ;;  %p2212_p7 = scmp.eq.s32.totalorder %s1560_s0, 0 }
  0x41   : > { %s132_s18 = sld [smem:[#allocation6]]  ;;  %s1507_s28 = smov [#allocation2]  }
  0x42   : > { %921 = sst [smem:[#allocation4]] (%p2212_p7), %s1506_s27  ;;  %s140_s29 = sshll.u32 %s1507_s28, 4  ;;  %s1630_s29 = int_to_ptr.vmem [resolvable:$true] %s140_s29 }
  0x43   : > { %s1632_s30 = sld [smem:[#allocation6 + $0x1]]  ;;  %s1508_s5 = smov [#allocation2 + $0x1]  }
  0x44   : > { %s1634_s4 = sld [smem:[#allocation6 + $0x2]]  ;;  %s154_s6 = sshll.u32 %s1508_s5, 4  ;;  %s1636_s6 = int_to_ptr.vmem [resolvable:$true] %s154_s6 }
  0x45   : > { %s1509_s23 = smov [#allocation2 + $0x2]   ;;  %p2213_p9 = pmov %p2212_p7 }
  0x46   : > { %s168_s7 = sshll.u32 %s1509_s23, 4  ;;  %s1638_s7 = int_to_ptr.vmem [resolvable:$true] %s168_s7 }
  0x47   : > { %s133_s8 = sshrl.u32 %s132_s18, 3  ;;  %s134_s9 = sand.u32 7, %s132_s18  }
  0x48   : > { %s788_s10 = sshll.u32 %s133_s8, 4  ;;  %s1650_s18 = scalar_lea.hbm %s2179_s2, 2048 }
  0x49   : > { %s136_s11 = sadd.s32 %s788_s10, %s134_s9  ;;  %s145_s12 = sshrl.u32 %s1632_s30, 3 }
  0x4a   : > { %s789_s13 = sshll.u32 %s136_s11, 4  ;;  %s146_s14 = sand.u32 7, %s1632_s30  }
  0x4b   : > { %s138_s21 = scalar_lea.hbm %s2179_s2, %s789_s13  ;;  %s791_s25 = sshll.u32 %s145_s12, 4 }
  0x4c   : > { %s1020_s27 = scalar_lea.hbm %s138_s21, 32  ;;  %p1025_p3 = scmp.lt.s32.totalorder %s138_s21, %s2179_s2 }
  0x4d   : > { %p1021_p8 = scmp.ne.s32.totalorder %s138_s21, %s1020_s27  ;;  %p1026_p4 = scmp.lt.s32.totalorder %s1650_s18, %s1020_s27 }
  0x4f   : > { %p1022_p10 = pnand %p1021_p8, %p2213_p9  ;;  %p1027_p6 = por %p1026_p4, %p1025_p3 }
  0x51   : > { %p1023_p2 = pneg %p1022_p10 }
  0x53   : > { %p1028_p11 = pnand %p1027_p6, %p1023_p2 }
  0x55   : > { %1031 = shalt.err (!%p1028_p11)  }
  0x56   : > { %s1032_s9 = scalar_lea.vmem %s1630_s29, 32  ;;  %p2214_p0 = pmov %p2212_p7 }
  0x57   : > { %p1033_p13 = scmp.ne.s32.totalorder %s1630_s29, %s1032_s9  ;;  %s1661_s10 = scalar_lea.vmem %s1630_s29, 512 }
  0x58   : > { %p1039_p5 = scmp.lt.s32.totalorder %s1630_s29, %s1630_s29  ;;  %p1040_p7 = scmp.lt.s32.totalorder %s1661_s10, %s1032_s9 }
  0x59   : > { %p1034_p1 = pnand %p1033_p13, %p2214_p0 }
  0x5a   : > { %p1041_p8 = por %p1040_p7, %p1039_p5 }
  0x5b   : > { %p1035_p12 = pneg %p1034_p1 }
  0x5d   : > { %p1042_p9 = pnand %p1041_p8, %p1035_p12 }
  0x5f   : > { %1045 = shalt.err (!%p1042_p9)  }
  0x60   : > { %s2183_s11 = smov 128   ;;  %s2186_s12 = smov 1  }
  0x61   : > { %p2215_p10 = pmov %p2214_p0  ;;  %s148_s13 = sadd.s32 %s791_s25, %s146_s14 }
  0x62   : > { %s159_s15 = sshrl.u32 %s1634_s4, 3  ;;  %s792_s20 = sshll.u32 %s148_s13, 4 }
  0x63   : > { %887 = dma.hbm_to_vmem [thread:$0]  (%p2215_p10), %s138_s21, 32, %s1630_s29, [#allocation3], %s2183_s11, %s2183_s11, %s2186_s12 }
  0x64   : > { %s160_s27 = sand.u32 7, %s1634_s4   ;;  %s150_s23 = scalar_lea.hbm %s2179_s2, %s792_s20 }
  0x65   : > { %s794_s8 = sshll.u32 %s159_s15, 4  ;;  %s1046_s9 = scalar_lea.hbm %s150_s23, 32 }
  0x66   : > { %p1047_p2 = scmp.ne.s32.totalorder %s150_s23, %s1046_s9  ;;  %p2216_p3 = pmov %p2214_p0 }
  0x67   : > { %p1051_p11 = scmp.lt.s32.totalorder %s150_s23, %s2179_s2  ;;  %p1052_p13 = scmp.lt.s32.totalorder %s1650_s18, %s1046_s9 }
  0x68   : > { %p1048_p4 = pnand %p1047_p2, %p2216_p3 }
  0x69   : > { %p1053_p0 = por %p1052_p13, %p1051_p11 }
  0x6a   : > { %p1049_p6 = pneg %p1048_p4 }
  0x6c   : > { %p1054_p1 = pnand %p1053_p0, %p1049_p6 }
  0x6e   : > { %1057 = shalt.err (!%p1054_p1)  }
  0x6f   : > { %s1058_s30 = scalar_lea.vmem %s1636_s6, 32  ;;  %p2217_p5 = pmov %p2216_p3 }
  0x70   : > { %p1059_p12 = scmp.ne.s32.totalorder %s1636_s6, %s1058_s30  ;;  %p1065_p9 = scmp.lt.s32.totalorder %s1636_s6, %s1630_s29 }
  0x71   : > { %p1066_p10 = scmp.lt.s32.totalorder %s1661_s10, %s1058_s30 }
  0x72   : > { %p1060_p7 = pnand %p1059_p12, %p2217_p5 }
  0x73   : > { %p1067_p2 = por %p1066_p10, %p1065_p9 }
  0x74   : > { %p1061_p8 = pneg %p1060_p7 }
  0x76   : > { %p1068_p3 = pnand %p1067_p2, %p1061_p8 }
  0x78   : > { %1071 = shalt.err (!%p1068_p3)  }
  0x79   : > { %p2218_p4 = pmov %p2217_p5  ;;  %s162_s1 = sadd.s32 %s794_s8, %s160_s27 }
  0x7a   : > { %s1698_s26 = sld [smem:[#allocation6 + $0x3]]  ;;  %s795_s4 = sshll.u32 %s162_s1, 4 }
  0x7b   : > { %888 = dma.hbm_to_vmem [thread:$0]  (%p2218_p4), %s150_s23, 32, %s1636_s6, [#allocation3 + $0x1], %s2183_s11, %s2183_s11, %s2186_s12 }
  0x7c   : > { %s164_s25 = scalar_lea.hbm %s2179_s2, %s795_s4  ;;  %s1512_s13 = smov [#allocation2 + $0x3]  }
  0x7d   : > { %s182_s15 = sshll.u32 %s1512_s13, 4  ;;  %s1072_s20 = scalar_lea.hbm %s164_s25, 32  ;;  %s1722_s15 = int_to_ptr.vmem [resolvable:$true] %s182_s15 }
  0x7e   : > { %p1073_p6 = scmp.ne.s32.totalorder %s164_s25, %s1072_s20  ;;  %p2219_p11 = pmov %p2218_p4 }
  0x7f   : > { %p1077_p1 = scmp.lt.s32.totalorder %s164_s25, %s2179_s2  ;;  %p1078_p12 = scmp.lt.s32.totalorder %s1650_s18, %s1072_s20 }
  0x80   : > { %p1074_p13 = pnand %p1073_p6, %p2219_p11 }
  0x81   : > { %p1079_p5 = por %p1078_p12, %p1077_p1 }
  0x82   : > { %p1075_p0 = pneg %p1074_p13 }
  0x84   : > { %p1080_p7 = pnand %p1079_p5, %p1075_p0 }
  0x86   : > { %1083 = shalt.err (!%p1080_p7)  }
  0x87   : > { %s1084_s6 = scalar_lea.vmem %s1638_s7, 32  ;;  %p2220_p9 = pmov %p2218_p4 }
  0x88   : > { %p1085_p8 = scmp.ne.s32.totalorder %s1638_s7, %s1084_s6  ;;  %p1091_p3 = scmp.lt.s32.totalorder %s1638_s7, %s1630_s29 }
  0x89   : > { %p1092_p4 = scmp.lt.s32.totalorder %s1661_s10, %s1084_s6 }
  0x8a   : > { %p1086_p10 = pnand %p1085_p8, %p2220_p9 }
  0x8b   : > { %p1093_p6 = por %p1092_p4, %p1091_p3 }
  0x8c   : > { %p1087_p2 = pneg %p1086_p10 }
  0x8e   : > { %p1094_p11 = pnand %p1093_p6, %p1087_p2 }
  0x90   : > { %1097 = shalt.err (!%p1094_p11)  }
  0x91   : > { %p2221_p13 = pmov %p2220_p9  ;;  %s1724_s27 = sld [smem:[#allocation6 + $0x4]] }
  0x92   : > { %s1726_s23 = sld [smem:[#allocation6 + $0x5]]  ;;  %s173_s8 = sshrl.u32 %s1698_s26, 3 }
  0x93   : > { %889 = dma.hbm_to_vmem [thread:$0]  (%p2221_p13), %s164_s25, 32, %s1638_s7, [#allocation3 + $0x2], %s2183_s11, %s2183_s11, %s2186_s12 }
  0x94   : > { %s174_s9 = sand.u32 7, %s1698_s26   ;;  %s797_s30 = sshll.u32 %s173_s8, 4 }
  0x95   : > { %s1513_s1 = smov [#allocation2 + $0x4]   ;;  %s176_s14 = sadd.s32 %s797_s30, %s174_s9 }
  0x96   : > { %s196_s4 = sshll.u32 %s1513_s1, 4  ;;  %s798_s21 = sshll.u32 %s176_s14, 4  ;;  %s1730_s4 = int_to_ptr.vmem [resolvable:$true] %s196_s4 }
  0x97   : > { %s178_s25 = scalar_lea.hbm %s2179_s2, %s798_s21  ;;  %s187_s20 = sshrl.u32 %s1724_s27, 3 }
  0x98   : > { %s1098_s28 = scalar_lea.hbm %s178_s25, 32  ;;  %p2222_p1 = pmov %p2220_p9 }
  0x99   : > { %p1099_p0 = scmp.ne.s32.totalorder %s178_s25, %s1098_s28  ;;  %p1103_p7 = scmp.lt.s32.totalorder %s178_s25, %s2179_s2 }
  0x9a   : > { %p1104_p8 = scmp.lt.s32.totalorder %s1650_s18, %s1098_s28 }
  0x9b   : > { %p1100_p12 = pnand %p1099_p0, %p2222_p1 }
  0x9c   : > { %p1105_p9 = por %p1104_p8, %p1103_p7 }
  0x9d   : > { %p1101_p5 = pneg %p1100_p12 }
  0x9f   : > { %p1106_p10 = pnand %p1105_p9, %p1101_p5 }
  0xa1   : > { %1109 = shalt.err (!%p1106_p10)  }
  0xa2   : > { %s1110_s26 = scalar_lea.vmem %s1722_s15, 32  ;;  %p2223_p3 = pmov %p2222_p1 }
  0xa3   : > { %p1111_p2 = scmp.ne.s32.totalorder %s1722_s15, %s1110_s26  ;;  %p1117_p11 = scmp.lt.s32.totalorder %s1722_s15, %s1630_s29 }
  0xa4   : > { %p1118_p13 = scmp.lt.s32.totalorder %s1661_s10, %s1110_s26 }
  0xa5   : > { %p1112_p4 = pnand %p1111_p2, %p2223_p3 }
  0xa6   : > { %p1119_p0 = por %p1118_p13, %p1117_p11 }
  0xa7   : > { %p1113_p6 = pneg %p1112_p4 }
  0xa9   : > { %p1120_p1 = pnand %p1119_p0, %p1113_p6 }
  0xab   : > { %1123 = shalt.err (!%p1120_p1)  }
  0xac   : > { %p2224_p12 = pmov %p2223_p3  ;;  %s188_s8 = sand.u32 7, %s1724_s27  }
  0xad   : > { %s800_s9 = sshll.u32 %s187_s20, 4  ;;  %s201_s1 = sshrl.u32 %s1726_s23, 3 }
  0xae   : > { %890 = dma.hbm_to_vmem [thread:$0]  (%p2224_p12), %s178_s25, 32, %s1722_s15, [#allocation3 + $0x3], %s2183_s11, %s2183_s11, %s2186_s12 }
  0xaf   : > { %s190_s30 = sadd.s32 %s800_s9, %s188_s8  ;;  %s202_s21 = sand.u32 7, %s1726_s23  }
  0xb0   : > { %s801_s14 = sshll.u32 %s190_s30, 4  ;;  %s803_s5 = sshll.u32 %s201_s1, 4 }
  0xb1   : > { %s192_s28 = scalar_lea.hbm %s2179_s2, %s801_s14  ;;  %p2225_p7 = pmov %p2223_p3 }
  0xb2   : > { %s1124_s6 = scalar_lea.hbm %s192_s28, 32  ;;  %p1129_p10 = scmp.lt.s32.totalorder %s192_s28, %s2179_s2 }
  0xb3   : > { %p1125_p5 = scmp.ne.s32.totalorder %s192_s28, %s1124_s6  ;;  %p1130_p2 = scmp.lt.s32.totalorder %s1650_s18, %s1124_s6 }
  0xb5   : > { %p1126_p8 = pnand %p1125_p5, %p2225_p7  ;;  %p1131_p3 = por %p1130_p2, %p1129_p10 }
  0xb7   : > { %p1127_p9 = pneg %p1126_p8 }
  0xb9   : > { %p1132_p4 = pnand %p1131_p3, %p1127_p9 }
  0xbb   : > { %1135 = shalt.err (!%p1132_p4)  }
  0xbc   : > { %s1136_s15 = scalar_lea.vmem %s1730_s4, 32  ;;  %p2226_p11 = pmov %p2225_p7 }
  0xbd   : > { %p1137_p6 = scmp.ne.s32.totalorder %s1730_s4, %s1136_s15  ;;  %p1143_p1 = scmp.lt.s32.totalorder %s1730_s4, %s1630_s29 }
  0xbe   : > { %p1144_p12 = scmp.lt.s32.totalorder %s1661_s10, %s1136_s15 }
  0xbf   : > { %p1138_p13 = pnand %p1137_p6, %p2226_p11 }
  0xc0   : > { %p1145_p5 = por %p1144_p12, %p1143_p1 }
  0xc1   : > { %p1139_p0 = pneg %p1138_p13 }
  0xc3   : > { %p1146_p7 = pnand %p1145_p5, %p1139_p0 }
  0xc5   : > { %1149 = shalt.err (!%p1146_p7)  }
  0xc6   : > { %p2227_p8 = pmov %p2226_p11  ;;  %s204_s22 = sadd.s32 %s803_s5, %s202_s21 }
  0xc7   : > { %s1514_s27 = smov [#allocation2 + $0x5]   ;;  %s804_s25 = sshll.u32 %s204_s22, 4 }
  0xc8   : > { %891 = dma.hbm_to_vmem [thread:$0]  (%p2227_p8), %s192_s28, 32, %s1730_s4, [#allocation3 + $0x4], %s2183_s11, %s2183_s11, %s2186_s12 }
  0xc9   : > { %s210_s23 = sshll.u32 %s1514_s27, 4  ;;  %s206_s9 = scalar_lea.hbm %s2179_s2, %s804_s25  ;;  %s211_s23 = int_to_ptr.vmem [resolvable:$true] %s210_s23 }
  0xca   : > { %s1783_s30 = sld [smem:[#allocation6 + $0x6]]  ;;  %s1150_s1 = scalar_lea.hbm %s206_s9, 32 }
  0xcb   : > { %p1151_p9 = scmp.ne.s32.totalorder %s206_s9, %s1150_s1  ;;  %p2228_p10 = pmov %p2227_p8 }
  0xcc   : > { %p1155_p4 = scmp.lt.s32.totalorder %s206_s9, %s2179_s2  ;;  %p1156_p6 = scmp.lt.s32.totalorder %s1650_s18, %s1150_s1 }
  0xcd   : > { %p1152_p2 = pnand %p1151_p9, %p2228_p10 }
  0xce   : > { %p1157_p11 = por %p1156_p6, %p1155_p4 }
  0xcf   : > { %p1153_p3 = pneg %p1152_p2 }
  0xd1   : > { %p1158_p13 = pnand %p1157_p11, %p1153_p3 }
  0xd3   : > { %1161 = shalt.err (!%p1158_p13)  }
  0xd4   : > { %s1162_s4 = scalar_lea.vmem %s211_s23, 32  ;;  %p2229_p1 = pmov %p2227_p8 }
  0xd5   : > { %p1163_p0 = scmp.ne.s32.totalorder %s211_s23, %s1162_s4  ;;  %p1169_p7 = scmp.lt.s32.totalorder %s211_s23, %s1630_s29 }
  0xd6   : > { %p1170_p8 = scmp.lt.s32.totalorder %s1661_s10, %s1162_s4 }
  0xd7   : > { %p1164_p12 = pnand %p1163_p0, %p2229_p1 }
  0xd8   : > { %p1171_p9 = por %p1170_p8, %p1169_p7 }
  0xd9   : > { %p1165_p5 = pneg %p1164_p12 }
  0xdb   : > { %p1172_p10 = pnand %p1171_p9, %p1165_p5 }
  0xdd   : > { %1175 = shalt.err (!%p1172_p10)  }
  0xde   : > { %p2230_p2 = pmov %p2229_p1  ;;  %s1800_s21 = sld [smem:[#allocation6 + $0x7]] }
  0xdf   : > { %s1515_s7 = smov [#allocation2 + $0x6]   ;;  %s1516_s5 = smov [#allocation2 + $0x7]  }
  0xe0   : > { %892 = dma.hbm_to_vmem [thread:$0]  (%p2230_p2), %s206_s9, 32, %s211_s23, [#allocation3 + $0x5], %s2183_s11, %s2183_s11, %s2186_s12 }
  0xe1   : > { %s224_s28 = sshll.u32 %s1515_s7, 4  ;;  %s238_s6 = sshll.u32 %s1516_s5, 4  ;;  %s1802_s28 = int_to_ptr.vmem [resolvable:$true] %s224_s28  ;;  %s1804_s6 = int_to_ptr.vmem [resolvable:$true] %s238_s6 }
  0xe2   : > { %s1807_s26 = sand.u32 1, %s1560_s0  ;;  %s215_s15 = sshrl.u32 %s1783_s30, 3 }
  0xe3   : > { %2231 = sst [smem:[#allocation52_spill]] %s1807_s26  ;;  %s216_s22 = sand.u32 7, %s1783_s30  }
  0xe4   : > { %s806_s27 = sshll.u32 %s215_s15, 4  ;;  %s242_s23 = sadd.s32 1, %s1560_s0 }
  0xe5   : > { %s218_s25 = sadd.s32 %s806_s27, %s216_s22  ;;  %s229_s20 = sshrl.u32 %s1800_s21, 3 }
  0xe6   : > { %s807_s8 = sshll.u32 %s218_s25, 4  ;;  %s230_s9 = sand.u32 7, %s1800_s21  }
  0xe7   : > { %s220_s13 = scalar_lea.hbm %s2179_s2, %s807_s8  ;;  %s809_s4 = sshll.u32 %s229_s20, 4 }
  0xe8   : > { %s1176_s7 = scalar_lea.hbm %s220_s13, 32  ;;  %p2232_p4 = pmov %p2229_p1 }
  0xe9   : > { %p1177_p3 = scmp.ne.s32.totalorder %s220_s13, %s1176_s7  ;;  %p1181_p13 = scmp.lt.s32.totalorder %s220_s13, %s2179_s2 }
  0xea   : > { %p1182_p0 = scmp.lt.s32.totalorder %s1650_s18, %s1176_s7 }
  0xeb   : > { %p1178_p6 = pnand %p1177_p3, %p2232_p4 }
  0xec   : > { %p1183_p1 = por %p1182_p0, %p1181_p13 }
  0xed   : > { %p1179_p11 = pneg %p1178_p6 }
  0xef   : > { %p1184_p12 = pnand %p1183_p1, %p1179_p11 }
  0xf1   : > { %1187 = shalt.err (!%p1184_p12)  }
  0xf2   : > { %s1188_s30 = scalar_lea.vmem %s1802_s28, 32  ;;  %p2233_p7 = pmov %p2230_p2 }
  0xf3   : > { %p1189_p5 = scmp.ne.s32.totalorder %s1802_s28, %s1188_s30  ;;  %p1195_p10 = scmp.lt.s32.totalorder %s1802_s28, %s1630_s29 }
  0xf4   : > { %p1196_p2 = scmp.lt.s32.totalorder %s1661_s10, %s1188_s30 }
  0xf5   : > { %p1190_p8 = pnand %p1189_p5, %p2233_p7 }
  0xf6   : > { %p1197_p3 = por %p1196_p2, %p1195_p10 }
  0xf7   : > { %p1191_p9 = pneg %p1190_p8 }
  0xf9   : > { %p1198_p4 = pnand %p1197_p3, %p1191_p9 }
  0xfb   : > { %1201 = shalt.err (!%p1198_p4)  }
  0xfc   : > { %p2234_p6 = pmov %p2233_p7  ;;  %s2235_s11 = smov 128  }
  0xfd   : > { %s232_s21 = sadd.s32 %s809_s4, %s230_s9  ;;  %p1838_p11 = scmp.lt.s32.totalorder %s242_s23, 4 }
  0xfe   : > { %893 = dma.hbm_to_vmem [thread:$0]  (%p2234_p6), %s220_s13, 32, %s1802_s28, [#allocation3 + $0x6], %s2235_s11, %s2235_s11, %s2186_s12 }
  0xff   : > { %s810_s15 = sshll.u32 %s232_s21, 4  ;;  %s247_s8 = ssub.s32 1, %s1807_s26 }
 0x100   : > { %s234_s20 = scalar_lea.hbm %s2179_s2, %s810_s15  ;;  %p2237_p0 = pmov %p2234_p6 }
 0x101   : > { %s1202_s1 = scalar_lea.hbm %s234_s20, 32  ;;  %p1207_p5 = scmp.lt.s32.totalorder %s234_s20, %s2179_s2 }
 0x102   : > { %p1203_p13 = scmp.ne.s32.totalorder %s234_s20, %s1202_s1  ;;  %p1208_p7 = scmp.lt.s32.totalorder %s1650_s18, %s1202_s1 }
 0x104   : > { %p1204_p1 = pnand %p1203_p13, %p2237_p0  ;;  %p1209_p8 = por %p1208_p7, %p1207_p5 }
 0x106   : > { %p1205_p12 = pneg %p1204_p1 }
 0x108   : > { %p1210_p9 = pnand %p1209_p8, %p1205_p12 }
 0x10a   : > { %1213 = shalt.err (!%p1210_p9)  }
 0x10b   : > { %s1214_s28 = scalar_lea.vmem %s1804_s6, 32  ;;  %p2238_p2 = pmov %p2237_p0 }
 0x10c   : > { %p1215_p10 = scmp.ne.s32.totalorder %s1804_s6, %s1214_s28  ;;  %p1221_p6 = scmp.lt.s32.totalorder %s1804_s6, %s1630_s29 }
 0x10d   : > { %p1222_p13 = scmp.lt.s32.totalorder %s1661_s10, %s1214_s28 }
 0x10e   : > { %p1216_p3 = pnand %p1215_p10, %p2238_p2 }
 0x10f   : > { %p1223_p0 = por %p1222_p13, %p1221_p6 }
 0x110   : > { %p1217_p4 = pneg %p1216_p3 }
 0x112   : > { %p1224_p1 = pnand %p1223_p0, %p1217_p4 }
 0x114   : > { %1227 = shalt.err (!%p1224_p1)  }
 0x115   : > { %p2239_p5 = pmov %p2238_p2  ;;  %s2185_s23 = sshll.u32 %s1560_s0, 3 }
 0x116   : > { %s815_s9 = sshll.u32 %s247_s8, 4  ;;  %s1868_s13 = sadd.s32 8, %s2185_s23 }
 0x117   : > { %894 = dma.hbm_to_vmem [thread:$0]  (%p2239_p5), %s234_s20, 32, %s1804_s6, [#allocation3 + $0x7], %s2235_s11, %s2235_s11, %s2186_s12 }
 0x118   : > { %s896_s4 = scalar_select %p1838_p11, [#allocation6], [#allocation27] }
 0x119   : > { %s897_s5 = scalar_select %p1838_p11, %s1868_s13, 0 }
 0x11a   : > { %s816_s30 = sshll.u32 %s247_s8, 3  ;;  %s1875_s21 = scalar_lea.vmem [#allocation2], %s815_s9 }
 0x11b   : > { %s261_s15 = sshll.u32 %s1875_s21, 4  ;;  %s249_s27 = sld [smem:[%s896_s4 + %s897_s5]]  ;;  %s1878_s15 = int_to_ptr.vmem [resolvable:$true] %s261_s15 }
 0x11c   : > { %s265_s25 = sadd.s32 1, %s1868_s13  ;;  %s670_s1 = scalar_lea.vmem %s1875_s21, 1 [#allocation2] }
 0x11d   : > { %s899_s20 = scalar_select %p1838_p11, [#allocation6], [#allocation28] }
 0x11e   : > { %s2262_s25 = smov (!%p1838_p11, %s265_s25), 0  ;;  %s1887_s14 = scalar_lea.sflag [#allocation3], %s816_s30 }
 0x11f   : > { %s1890_s4 = sld [smem:[%s899_s20 + %s2262_s25]]  ;;  %s278_s23 = sshll.u32 %s670_s1, 4  ;;  %s1892_s23 = int_to_ptr.vmem [resolvable:$true] %s278_s23 }
 0x121   : > { %s250_s7 = sshrl.u32 %s249_s27, 3  ;;  %s251_s28 = sand.u32 7, %s249_s27  }
 0x122   : > { %s813_s9 = sshll.u32 %s250_s7, 4 }
 0x123   : > { %s253_s5 = sadd.s32 %s813_s9, %s251_s28 }
 0x124   : > { %s814_s6 = sshll.u32 %s253_s5, 4 }
 0x125   : > { %s255_s16 = scalar_lea.hbm %s2179_s2, %s814_s6 }
 0x126   : > { %s1228_s30 = scalar_lea.hbm %s255_s16, 32  ;;  %p1233_p9 = scmp.lt.s32.totalorder %s255_s16, %s2179_s2 }
 0x127   : > { %p1229_p12 = scmp.ne.s32.totalorder %s255_s16, %s1228_s30  ;;  %p1234_p10 = scmp.lt.s32.totalorder %s1650_s18, %s1228_s30 }
 0x129   : > { %p1230_p7 = pnand %p1229_p12, %p1838_p11  ;;  %p1235_p2 = por %p1234_p10, %p1233_p9 }
 0x12b   : > { %p1231_p8 = pneg %p1230_p7 }
 0x12d   : > { %p1236_p3 = pnand %p1235_p2, %p1231_p8 }
 0x12f   : > { %1239 = shalt.err (!%p1236_p3)  }
 0x130   : > { %s1240_s17 = scalar_lea.vmem %s1878_s15, 32  ;;  %p1247_p0 = scmp.lt.s32.totalorder %s1878_s15, %s1630_s29 }
 0x131   : > { %p1241_p4 = scmp.ne.s32.totalorder %s1878_s15, %s1240_s17  ;;  %p1248_p1 = scmp.lt.s32.totalorder %s1661_s10, %s1240_s17 }
 0x133   : > { %p1242_p6 = pnand %p1241_p4, %p1838_p11  ;;  %p1249_p5 = por %p1248_p1, %p1247_p0 }
 0x135   : > { %p1243_p13 = pneg %p1242_p6 }
 0x137   : > { %p1250_p12 = pnand %p1249_p5, %p1243_p13 }
 0x139   : > { %1253 = shalt.err (!%p1250_p12)  }
 0x13a   : > { %s2240_s12 = smov 1   ;;  %s267_s25 = sshrl.u32 %s1890_s4, 3 }
 0x13b   : > { %898 = dma.hbm_to_vmem [thread:$0]  (%p1838_p11), %s255_s16, 32, %s1878_s15, %s1887_s14, %s2235_s11, %s2235_s11, %s2240_s12 }
 0x13c   : > { %s902_s6 = scalar_select %p1838_p11, [#allocation6], [#allocation29] }
 0x13d   : > { %s268_s20 = sand.u32 7, %s1890_s4   ;;  %s817_s1 = sshll.u32 %s267_s25, 4 }
 0x13e   : > { %s680_s8 = scalar_lea.vmem %s1875_s21, 2 [#allocation2]  ;;  %s270_s7 = sadd.s32 %s817_s1, %s268_s20 }
 0x13f   : > { %s818_s9 = sshll.u32 %s270_s7, 4  ;;  %s295_s5 = sshll.u32 %s680_s8, 4  ;;  %s1927_s5 = int_to_ptr.vmem [resolvable:$true] %s295_s5 }
 0x140   : > { %s272_s17 = scalar_lea.hbm %s2179_s2, %s818_s9 }
 0x141   : > { %s1254_s19 = scalar_lea.hbm %s272_s17, 32  ;;  %p1259_p10 = scmp.lt.s32.totalorder %s272_s17, %s2179_s2 }
 0x142   : > { %p1255_p7 = scmp.ne.s32.totalorder %s272_s17, %s1254_s19  ;;  %p1260_p2 = scmp.lt.s32.totalorder %s1650_s18, %s1254_s19 }
 0x144   : > { %p1256_p8 = pnand %p1255_p7, %p1838_p11  ;;  %p1261_p3 = por %p1260_p2, %p1259_p10 }
 0x146   : > { %p1257_p9 = pneg %p1256_p8 }
 0x148   : > { %p1262_p4 = pnand %p1261_p3, %p1257_p9 }
 0x14a   : > { %1265 = shalt.err (!%p1262_p4)  }
 0x14b   : > { %s1266_s4 = scalar_lea.vmem %s1892_s23, 32  ;;  %p1273_p1 = scmp.lt.s32.totalorder %s1892_s23, %s1630_s29 }
 0x14c   : > { %p1267_p6 = scmp.ne.s32.totalorder %s1892_s23, %s1266_s4  ;;  %p1274_p5 = scmp.lt.s32.totalorder %s1661_s10, %s1266_s4 }
 0x14e   : > { %p1268_p13 = pnand %p1267_p6, %p1838_p11  ;;  %p1275_p12 = por %p1274_p5, %p1273_p1 }
 0x150   : > { %p1269_p0 = pneg %p1268_p13 }
 0x152   : > { %p1276_p7 = pnand %p1275_p12, %p1269_p0 }
 0x154   : > { %1279 = shalt.err (!%p1276_p7)  }
 0x155   : > { %s2241_s19 = scalar_lea.sflag %s1887_s14, 1 [#allocation3]  ;;  %s2242_s25 = sadd.s32 2, %s1868_s13 }
 0x156   : > { %901 = dma.hbm_to_vmem [thread:$0]  (%p1838_p11), %s272_s17, 32, %s1892_s23, %s2241_s19, %s2235_s11, %s2235_s11, %s2240_s12 }
 0x157   : > { %s2264_s25 = smov (!%p1838_p11, %s2242_s25), 0  ;;  %s299_s20 = sadd.s32 3, %s1868_s13 }
 0x158   : > { %s690_s1 = scalar_lea.vmem %s1875_s21, 3 [#allocation2]  ;;  %s283_s8 = sld [smem:[%s902_s6 + %s2264_s25]] }
 0x159   : > { %s905_s9 = scalar_select %p1838_p11, [#allocation6], [#allocation30] }
 0x15a   : > { %s2266_s20 = smov (!%p1838_p11, %s299_s20), 0  ;;  %s312_s30 = sshll.u32 %s690_s1, 4  ;;  %s1967_s30 = int_to_ptr.vmem [resolvable:$true] %s312_s30 }
 0x15b   : > { %s1965_s16 = sld [smem:[%s905_s9 + %s2266_s20]]  ;;  %s700_s6 = scalar_lea.vmem %s1875_s21, 4 [#allocation2] }
 0x15c   : > { %s329_s28 = sshll.u32 %s700_s6, 4  ;;  %s1999_s28 = int_to_ptr.vmem [resolvable:$true] %s329_s28 }
 0x15e   : > { %s284_s17 = sshrl.u32 %s283_s8, 3  ;;  %s285_s15 = sand.u32 7, %s283_s8  }
 0x15f   : > { %s821_s4 = sshll.u32 %s284_s17, 4 }
 0x160   : > { %s287_s19 = sadd.s32 %s821_s4, %s285_s15 }
 0x161   : > { %s822_s7 = sshll.u32 %s287_s19, 4  ;;  %s301_s20 = sshrl.u32 %s1965_s16, 3 }
 0x162   : > { %s289_s27 = scalar_lea.hbm %s2179_s2, %s822_s7 }
 0x163   : > { %s1280_s9 = scalar_lea.hbm %s289_s27, 32  ;;  %p1285_p2 = scmp.lt.s32.totalorder %s289_s27, %s2179_s2 }
 0x164   : > { %p1281_p8 = scmp.ne.s32.totalorder %s289_s27, %s1280_s9  ;;  %p1286_p3 = scmp.lt.s32.totalorder %s1650_s18, %s1280_s9 }
 0x166   : > { %p1282_p9 = pnand %p1281_p8, %p1838_p11  ;;  %p1287_p4 = por %p1286_p3, %p1285_p2 }
 0x168   : > { %p1283_p10 = pneg %p1282_p9 }
 0x16a   : > { %p1288_p6 = pnand %p1287_p4, %p1283_p10 }
 0x16c   : > { %1291 = shalt.err (!%p1288_p6)  }
 0x16d   : > { %s1292_s3 = scalar_lea.vmem %s1927_s5, 32  ;;  %p1299_p5 = scmp.lt.s32.totalorder %s1927_s5, %s1630_s29 }
 0x16e   : > { %p1293_p13 = scmp.ne.s32.totalorder %s1927_s5, %s1292_s3  ;;  %p1300_p12 = scmp.lt.s32.totalorder %s1661_s10, %s1292_s3 }
 0x170   : > { %p1294_p0 = pnand %p1293_p13, %p1838_p11  ;;  %p1301_p7 = por %p1300_p12, %p1299_p5 }
 0x172   : > { %p1295_p1 = pneg %p1294_p0 }
 0x174   : > { %p1302_p8 = pnand %p1301_p7, %p1295_p1 }
 0x176   : > { %1305 = shalt.err (!%p1302_p8)  }
 0x177   : > { %s2243_s0 = scalar_lea.sflag %s1887_s14, 2 [#allocation3]  ;;  %s302_s8 = sand.u32 7, %s1965_s16  }
 0x178   : > { %904 = dma.hbm_to_vmem [thread:$0]  (%p1838_p11), %s289_s27, 32, %s1927_s5, %s2243_s0, %s2235_s11, %s2235_s11, %s2240_s12 }
 0x179   : > { %s825_s7 = sshll.u32 %s301_s20, 4  ;;  %s333_s15 = sadd.s32 5, %s1868_s13 }
 0x17a   : > { %s304_s23 = sadd.s32 %s825_s7, %s302_s8  ;;  %s710_s1 = scalar_lea.vmem %s1875_s21, 5 [#allocation2] }
 0x17b   : > { %s826_s17 = sshll.u32 %s304_s23, 4 }
 0x17c   : > { %s306_s19 = scalar_lea.hbm %s2179_s2, %s826_s17 }
 0x17d   : > { %s1306_s9 = scalar_lea.hbm %s306_s19, 32  ;;  %p1311_p3 = scmp.lt.s32.totalorder %s306_s19, %s2179_s2 }
 0x17e   : > { %p1307_p9 = scmp.ne.s32.totalorder %s306_s19, %s1306_s9  ;;  %p1312_p4 = scmp.lt.s32.totalorder %s1650_s18, %s1306_s9 }
 0x180   : > { %p1308_p10 = pnand %p1307_p9, %p1838_p11  ;;  %p1313_p6 = por %p1312_p4, %p1311_p3 }
 0x182   : > { %p1309_p2 = pneg %p1308_p10 }
 0x184   : > { %p1314_p13 = pnand %p1313_p6, %p1309_p2 }
 0x186   : > { %1317 = shalt.err (!%p1314_p13)  }
 0x187   : > { %s1318_s5 = scalar_lea.vmem %s1967_s30, 32  ;;  %p1325_p12 = scmp.lt.s32.totalorder %s1967_s30, %s1630_s29 }
 0x188   : > { %p1319_p0 = scmp.ne.s32.totalorder %s1967_s30, %s1318_s5  ;;  %p1326_p7 = scmp.lt.s32.totalorder %s1661_s10, %s1318_s5 }
 0x18a   : > { %p1320_p1 = pnand %p1319_p0, %p1838_p11  ;;  %p1327_p8 = por %p1326_p7, %p1325_p12 }
 0x18c   : > { %p1321_p5 = pneg %p1320_p1 }
 0x18e   : > { %p1328_p9 = pnand %p1327_p8, %p1321_p5 }
 0x190   : > { %1331 = shalt.err (!%p1328_p9)  }
 0x191   : > { %s2244_s27 = scalar_lea.sflag %s1887_s14, 3 [#allocation3]  ;;  %s2245_s16 = sadd.s32 4, %s1868_s13 }
 0x192   : > { %907 = dma.hbm_to_vmem [thread:$0]  (%p1838_p11), %s306_s19, 32, %s1967_s30, %s2244_s27, %s2235_s11, %s2235_s11, %s2240_s12 }
 0x193   : > { %s2268_s16 = smov (!%p1838_p11, %s2245_s16), 0  ;;  %s2270_s15 = smov (!%p1838_p11, %s333_s15), 0 }
 0x194   : > { %s911_s25 = scalar_select %p1838_p11, [#allocation6], [#allocation32] }
 0x195   : > { %s2246_s20 = scalar_select %p1838_p11, [#allocation6], [#allocation31] }
 0x196   : > { %s346_s7 = sshll.u32 %s710_s1, 4  ;;  %s350_s23 = sadd.s32 6, %s1868_s13  ;;  %s2042_s7 = int_to_ptr.vmem [resolvable:$true] %s346_s7 }
 0x197   : > { %s317_s0 = sld [smem:[%s2246_s20 + %s2268_s16]]  ;;  %s2272_s23 = smov (!%p1838_p11, %s350_s23), 0 }
 0x198   : > { %s2040_s17 = sld [smem:[%s911_s25 + %s2270_s15]]  ;;  %s720_s1 = scalar_lea.vmem %s1875_s21, 6 [#allocation2] }
 0x199   : > { %s914_s30 = scalar_select %p1838_p11, [#allocation6], [#allocation33] }
 0x19b   : > { %s2048_s9 = sld [smem:[%s914_s30 + %s2272_s23]] }
 0x19d   : > { %s318_s4 = sshrl.u32 %s317_s0, 3  ;;  %s319_s6 = sand.u32 7, %s317_s0  }
 0x19e   : > { %s829_s19 = sshll.u32 %s318_s4, 4  ;;  %s335_s15 = sshrl.u32 %s2040_s17, 3 }
 0x19f   : > { %s321_s3 = sadd.s32 %s829_s19, %s319_s6  ;;  %s336_s20 = sand.u32 7, %s2040_s17  }
 0x1a0   : > { %s830_s5 = sshll.u32 %s321_s3, 4 }
 0x1a1   : > { %s323_s25 = scalar_lea.hbm %s2179_s2, %s830_s5 }
 0x1a2   : > { %s1332_s8 = scalar_lea.hbm %s323_s25, 32  ;;  %p1337_p4 = scmp.lt.s32.totalorder %s323_s25, %s2179_s2 }
 0x1a3   : > { %p1333_p10 = scmp.ne.s32.totalorder %s323_s25, %s1332_s8  ;;  %p1338_p6 = scmp.lt.s32.totalorder %s1650_s18, %s1332_s8 }
 0x1a5   : > { %p1334_p2 = pnand %p1333_p10, %p1838_p11  ;;  %p1339_p13 = por %p1338_p6, %p1337_p4 }
 0x1a7   : > { %p1335_p3 = pneg %p1334_p2 }
 0x1a9   : > { %p1340_p0 = pnand %p1339_p13, %p1335_p3 }
 0x1ab   : > { %1343 = shalt.err (!%p1340_p0)  }
 0x1ac   : > { %s1344_s0 = scalar_lea.vmem %s1999_s28, 32  ;;  %p1351_p7 = scmp.lt.s32.totalorder %s1999_s28, %s1630_s29 }
 0x1ad   : > { %p1345_p1 = scmp.ne.s32.totalorder %s1999_s28, %s1344_s0  ;;  %p1352_p8 = scmp.lt.s32.totalorder %s1661_s10, %s1344_s0 }
 0x1af   : > { %p1346_p5 = pnand %p1345_p1, %p1838_p11  ;;  %p1353_p9 = por %p1352_p8, %p1351_p7 }
 0x1b1   : > { %p1347_p12 = pneg %p1346_p5 }
 0x1b3   : > { %p1354_p10 = pnand %p1353_p9, %p1347_p12 }
 0x1b5   : > { %1357 = shalt.err (!%p1354_p10)  }
 0x1b6   : > { %s2247_s24 = scalar_lea.sflag %s1887_s14, 4 [#allocation3]  ;;  %s833_s26 = sshll.u32 %s335_s15, 4 }
 0x1b7   : > { %910 = dma.hbm_to_vmem [thread:$0]  (%p1838_p11), %s323_s25, 32, %s1999_s28, %s2247_s24, %s2235_s11, %s2235_s11, %s2240_s12 }
 0x1b8   : > { %s723_s8 = scalar_lea.sflag %s1887_s14, 6 [#allocation3]  ;;  %s338_s23 = sadd.s32 %s833_s26, %s336_s20 }
 0x1b9   : > { %s352_s17 = sshrl.u32 %s2048_s9, 3  ;;  %s834_s30 = sshll.u32 %s338_s23, 4 }
 0x1ba   : > { %s353_s4 = sand.u32 7, %s2048_s9   ;;  %s340_s3 = scalar_lea.hbm %s2179_s2, %s834_s30 }
 0x1bb   : > { %s837_s5 = sshll.u32 %s352_s17, 4  ;;  %s1358_s27 = scalar_lea.hbm %s340_s3, 32 }
 0x1bc   : > { %p1359_p2 = scmp.ne.s32.totalorder %s340_s3, %s1358_s27  ;;  %p1363_p6 = scmp.lt.s32.totalorder %s340_s3, %s2179_s2 }
 0x1bd   : > { %p1364_p13 = scmp.lt.s32.totalorder %s1650_s18, %s1358_s27 }
 0x1be   : > { %p1360_p3 = pnand %p1359_p2, %p1838_p11 }
 0x1bf   : > { %p1365_p0 = por %p1364_p13, %p1363_p6 }
 0x1c0   : > { %p1361_p4 = pneg %p1360_p3 }
 0x1c2   : > { %p1366_p1 = pnand %p1365_p0, %p1361_p4 }
 0x1c4   : > { %1369 = shalt.err (!%p1366_p1)  }
 0x1c5   : > { %s1370_s28 = scalar_lea.vmem %s2042_s7, 32  ;;  %p1377_p8 = scmp.lt.s32.totalorder %s2042_s7, %s1630_s29 }
 0x1c6   : > { %p1371_p5 = scmp.ne.s32.totalorder %s2042_s7, %s1370_s28  ;;  %p1378_p9 = scmp.lt.s32.totalorder %s1661_s10, %s1370_s28 }
 0x1c8   : > { %p1372_p12 = pnand %p1371_p5, %p1838_p11  ;;  %p1379_p10 = por %p1378_p9, %p1377_p8 }
 0x1ca   : > { %p1373_p7 = pneg %p1372_p12 }
 0x1cc   : > { %p1380_p2 = pnand %p1379_p10, %p1373_p7 }
 0x1ce   : > { %1383 = shalt.err (!%p1380_p2)  }
 0x1cf   : > { %s2248_s9 = scalar_lea.sflag %s1887_s14, 5 [#allocation3]  ;;  %s355_s15 = sadd.s32 %s837_s5, %s353_s4 }
 0x1d0   : > { %913 = dma.hbm_to_vmem [thread:$0]  (%p1838_p11), %s340_s3, 32, %s2042_s7, %s2248_s9, %s2235_s11, %s2235_s11, %s2240_s12 }
 0x1d1   : > { %s363_s25 = sshll.u32 %s720_s1, 4  ;;  %s838_s20 = sshll.u32 %s355_s15, 4  ;;  %s364_s25 = int_to_ptr.vmem [resolvable:$true] %s363_s25 }
 0x1d2   : > { %s357_s23 = scalar_lea.hbm %s2179_s2, %s838_s20  ;;  %s367_s17 = sadd.s32 7, %s1868_s13 }
 0x1d3   : > { %s1384_s30 = scalar_lea.hbm %s357_s23, 32  ;;  %p1389_p13 = scmp.lt.s32.totalorder %s357_s23, %s2179_s2 }
 0x1d4   : > { %p1385_p3 = scmp.ne.s32.totalorder %s357_s23, %s1384_s30  ;;  %p1390_p0 = scmp.lt.s32.totalorder %s1650_s18, %s1384_s30 }
 0x1d6   : > { %p1386_p4 = pnand %p1385_p3, %p1838_p11  ;;  %p1391_p1 = por %p1390_p0, %p1389_p13 }
 0x1d8   : > { %p1387_p6 = pneg %p1386_p4 }
 0x1da   : > { %p1392_p5 = pnand %p1391_p1, %p1387_p6 }
 0x1dc   : > { %1395 = shalt.err (!%p1392_p5)  }
 0x1dd   : > { %s1396_s7 = scalar_lea.vmem %s364_s25, 32  ;;  %p1403_p9 = scmp.lt.s32.totalorder %s364_s25, %s1630_s29 }
 0x1de   : > { %p1397_p12 = scmp.ne.s32.totalorder %s364_s25, %s1396_s7  ;;  %p1404_p10 = scmp.lt.s32.totalorder %s1661_s10, %s1396_s7 }
 0x1e0   : > { %p1398_p7 = pnand %p1397_p12, %p1838_p11  ;;  %p1405_p2 = por %p1404_p10, %p1403_p9 }
 0x1e2   : > { %p1399_p8 = pneg %p1398_p7 }
 0x1e4   : > { %p1406_p3 = pnand %p1405_p2, %p1399_p8 }
 0x1e6   : > { %1409 = shalt.err (!%p1406_p3)  }
 0x1e7   : > { %916 = dma.hbm_to_vmem [thread:$0]  (%p1838_p11), %s357_s23, 32, %s364_s25, %s723_s8, %s2235_s11, %s2235_s11, %s2240_s12 }
 0x1e8   : > { %s917_s13 = scalar_select %p1838_p11, [#allocation6], [#allocation34] }
 0x1e9   : > { %s2274_s17 = smov (!%p1838_p11, %s367_s17), 0  ;;  %s730_s4 = scalar_lea.vmem %s1875_s21, 7 [#allocation2] }
 0x1ea   : > { %s368_s1 = sld [smem:[%s917_s13 + %s2274_s17]]  ;;  %s380_s3 = sshll.u32 %s730_s4, 4  ;;  %s381_s3 = int_to_ptr.vmem [resolvable:$true] %s380_s3 }
 0x1eb   : > { %s733_s0 = scalar_lea.sflag %s1887_s14, 7 [#allocation3] }
 0x1f0   : > { %s369_s5 = sshrl.u32 %s368_s1, 3  ;;  %s370_s27 = sand.u32 7, %s368_s1  }
 0x1f1   : > { %s841_s16 = sshll.u32 %s369_s5, 4 }
 0x1f2   : > { %s372_s28 = sadd.s32 %s841_s16, %s370_s27 }
 0x1f3   : > { %s842_s9 = sshll.u32 %s372_s28, 4 }
 0x1f4   : > { %s374_s8 = scalar_lea.hbm %s2179_s2, %s842_s9 }
 0x1f5   : > { %s1410_s25 = scalar_lea.hbm %s374_s8, 32  ;;  %p1415_p0 = scmp.lt.s32.totalorder %s374_s8, %s2179_s2 }
 0x1f6   : > { %p1411_p4 = scmp.ne.s32.totalorder %s374_s8, %s1410_s25  ;;  %p1416_p1 = scmp.lt.s32.totalorder %s1650_s18, %s1410_s25 }
 0x1f8   : > { %p1412_p6 = pnand %p1411_p4, %p1838_p11  ;;  %p1417_p5 = por %p1416_p1, %p1415_p0 }
 0x1fa   : > { %p1413_p13 = pneg %p1412_p6 }
 0x1fc   : > { %p1418_p12 = pnand %p1417_p5, %p1413_p13 }
 0x1fe   : > { %1421 = shalt.err (!%p1418_p12)  }
 0x1ff   : > { %s1422_s21 = scalar_lea.vmem %s381_s3, 32  ;;  %p1429_p10 = scmp.lt.s32.totalorder %s381_s3, %s1630_s29 }
 0x200   : > { %p1423_p7 = scmp.ne.s32.totalorder %s381_s3, %s1422_s21  ;;  %p1430_p2 = scmp.lt.s32.totalorder %s1661_s10, %s1422_s21 }
 0x202   : > { %p1424_p8 = pnand %p1423_p7, %p1838_p11  ;;  %p1431_p3 = por %p1430_p2, %p1429_p10 }
 0x204   : > { %p1425_p9 = pneg %p1424_p8 }
 0x206   : > { %p1432_p4 = pnand %p1431_p3, %p1425_p9 }
 0x208   : > { %1435 = shalt.err (!%p1432_p4)  }
 0x209   : > { %s2249_s18 = sld [smem:[#allocation52_spill]] }
 0x20a   : > { %919 = dma.hbm_to_vmem [thread:$0]  (%p1838_p11), %s374_s8, 32, %s381_s3, %s733_s0, %s2235_s11, %s2235_s11, %s2240_s12 }
 0x20f   : > { %s2250_s14 = sshll.u32 %s2249_s18, 3 }
 0x210   : > { %s390_s23 = scalar_lea.sflag [#allocation3], %s2250_s14 }
 0x211   : > { %1468 = dma.done.wait %s390_s23, 32 }
 0x212   : > { %1469 = vsyncadd %s390_s23, 4294967264  ;;  %s738_s17 = scalar_lea.sflag %s390_s23, 1 [#allocation3] }
 0x213   : > { %1470 = dma.done.wait %s738_s17, 32 }
 0x214   : > { %1471 = vsyncadd %s738_s17, 4294967264  ;;  %s741_s30 = scalar_lea.sflag %s390_s23, 2 [#allocation3] }
 0x215   : > { %1472 = dma.done.wait %s741_s30, 32 }
 0x216   : > { %1473 = vsyncadd %s741_s30, 4294967264  ;;  %s744_s29 = scalar_lea.sflag %s390_s23, 3 [#allocation3] }
 0x217   : > { %1474 = dma.done.wait %s744_s29, 32 }
 0x218   : > { %1475 = vsyncadd %s744_s29, 4294967264  ;;  %s747_s10 = scalar_lea.sflag %s390_s23, 4 [#allocation3] }
 0x219   : > { %1476 = dma.done.wait %s747_s10, 32 }
 0x21a   : > { %1477 = vsyncadd %s747_s10, 4294967264  ;;  %s750_s22 = scalar_lea.sflag %s390_s23, 5 [#allocation3] }
 0x21b   : > { %1478 = dma.done.wait %s750_s22, 32 }
 0x21c   : > { %1479 = vsyncadd %s750_s22, 4294967264  ;;  %s753_s11 = scalar_lea.sflag %s390_s23, 6 [#allocation3] }
 0x21d   : > { %1480 = dma.done.wait %s753_s11, 32 }
 0x21e   : > { %1481 = vsyncadd %s753_s11, 4294967264  ;;  %s756_s12 = scalar_lea.sflag %s390_s23, 7 [#allocation3] }
 0x21f   : > { %1482 = dma.done.wait %s756_s12, 32 }
 0x220   : > { %1483 = vsyncadd %s756_s12, 4294967264  ;;  %s2251_s6 = sld [smem:[#allocation51_spill]]  ;;  %s881_s19 = sshll.u32 %s2249_s18, 4  ;;  %v449_v13 = vlaneseq  ;;  %vm456_vm1 = vcmask 7168  }
 0x221   : > { %s425_s1 = scalar_lea.vmem [#allocation2], %s881_s19  ;;  %s2254_s4 = sld [smem:[#allocation48_spill]] }
 0x222   : > { %v426_v2 = vld [vmem:[%s425_s1] sm:$0xff]  ;;  %v427_v5 = vld [vmem:[%s425_s1 + $0x8] sm:$0xff]  ;;  %v450_v16 = vshrl.u32 %v449_v13, 7  ;;  %s455_s5 = sld [smem:[#allocation4]]  ;;  %s1517_s0 = smov [#allocation10]  }
 0x223   : > { %v433_v7 = vmul.f32 %v426_v2, %v426_v2  ;;  %v434_v9 = vmul.f32 %v427_v5, %v427_v5  ;;  %s2256_s15 = sld [smem:[#allocation54_spill]] }
 0x225   : > { %v435_v12 = vadd.f32 %v434_v9, %v433_v7 }
 0x226   : > { %s2252_s7 = scalar_lea.vmem [#allocation7], %s2251_s6 }
 0x227   : > { %v421_v0 = vld [vmem:[%s2252_s7] sm:$0xff]  ;;  %s2253_s13 = smov %s2252_s7  ;;  %s2255_s3 = sshll.u32 %s2254_s4, 3 }
 0x228   : > { %v422_v1 = vld [vmem:[%s2253_s13 + $0x8] sm:$0xff]  ;;  %v428_v3 = vmul.f32 %v421_v0, %v421_v0  ;;  %v438_v6 = vmul.f32 %v426_v2, %v421_v0  ;;  %v451_v18 = vstv %s2255_s3  ;;  %p936_p11 = scmp.eq.s32.totalorder %s2254_s4, 3 }
 0x229   : > { %v429_v4 = vmul.f32 %v422_v1, %v422_v1  ;;  %v439_v8 = vmul.f32 %v427_v5, %v422_v1  ;;  %v452_v21 = vadd.s32 %v451_v18, %v450_v16 }
 0x22b   : > { %v430_v10 = vadd.f32 %v429_v4, %v428_v3  ;;  %v440_v11 = vadd.f32 %v439_v8, %v438_v6  ;;  %vm453_vm0 = vcmp.lt.s32.totalorder %v452_v21, 32 }
 0x22d   : > { %431 = vadd.xlane.f32.xlu0 %v430_v10  ;;  %441 = vadd.xlane.f32.xlu1 %v440_v11 }
 0x231   : > { %436 = vadd.xlane.f32.xlu0 %v435_v12 }
 0x2b6   : > { %v432_v14 = vpop.xlane.xlu0 %431  ;;  %v442_v15 = vpop.xlane.xlu1 %441 }
 0x2b7   : > { %v444_v17 = vmul.f32 2.0, %v442_v15 }
 0x2ba   : > { %v437_v19 = vpop.xlane.xlu0 %436 }
 0x2bb   : > { %v443_v20 = vadd.f32 %v437_v19, %v432_v14 }
 0x2bd   : > { %v445_v22 = vsub.f32 %v443_v20, %v444_v17 }
 0x2bf   : > { %v446_v23 = vmax.f32 %v445_v22, 1e-12 }
 0x2c1   : > { %v447_v24 = vmin.f32 %v446_v23, 1e+12 }
 0x2c3   : > { %v454_v25 = vsel %vm453_vm0, %v447_v24, 0.0 }
 0x2c4   : > { %v457_v26 = vsel %vm456_vm1, %v454_v25, 0.0 }
 0x2c5   : > { %458 = vadd.xlane.f32.xlu1 %v457_v26 }
 0x34e   : > { %v459_v27 = vpop.xlane.xlu1 %458 }
 0x34f   : > { %v460_v28 = vrot.slane %v459_v27, 4 }
 0x351   : > { %v461_v29 = vadd.f32 %v460_v28, %v459_v27 }
 0x353   : > { %v462_v30 = vrot.slane %v461_v29, 2 }
 0x355   : > { %v463_v31 = vadd.f32 %v462_v30, %v461_v29 }
 0x357   : > { %v464_v32 = vrot.slane %v463_v31, 1 }
 0x359   : > { %v465_v33 = vadd.f32 %v464_v32, %v463_v31 }
 0x35b   : > { %882 = vpush %v465_v33 }
 0x38c   : > { %s883_s27 = spop %882 }
 0x38d   : > { %s467_s16 = sadd.f32 %s883_s27, %s455_s5 }
 0x38f   : > { %469 = sst [smem:[#allocation4]] %s467_s16 }
 0x390   : > { %923 = sst [smem:[#allocation10]] (%p936_p11), %s467_s16 }
 0x391   : > { %925 = dma.smem_to_hbm (%p936_p11), %s1517_s0, 16, %s2256_s15, [#allocation9]  }
 0x392   : > { %1485 = dma.done.wait (%p936_p11), [#allocation9], 16  }
 0x393   : > { %1487 = vsyncadd (%p936_p11), [#allocation9], 4294967280 }
 0x394   : > { %490 = sfence }
 0x395 PF: > { %s2257_s18 = sld [smem:[#allocation49_spill]] }
 0x396   : > { %s2258_s15 = sld [smem:[#allocation46_spill]] }
 0x397   : > { %s2259_s16 = sld [smem:[#allocation47_spill]] }
 0x398   : > { %s2260_s17 = sld [smem:[#allocation50_spill]] }
 0x39b   : > { %p18_p6 = scmp.ge.s32.totalorder %s2257_s18, 6  }
 0x39d   :  { %20 = sbr.rel (!%p18_p6) target bundleno = 11 (0xb), region = 150 }
 0x3a2   :  { %496 = vsyncpa [#allocation8], 1 }
 0x3a3   :  { %498 = vsyncpa [#allocation8 + $0x1], 1 }
 0x3a4   :  { %499 = vsyncpa [#allocation9], 1 }
 0x3a5   :  { %501 = vsyncpa [#allocation9 + $0x1], 1 }
 0x3a6   :  { %502 = vsyncmov [#allocation3] }
 0x3a9   :  { %s503_s20 = vpop.sfrf %502 }
 0x3aa   :  { %p862_p13 = scmp.ne.s32.totalorder %s503_s20, 0 }
 0x3ac   :  { %507 = shalt.err (%p862_p13)  }
 0x3ad   :  { %509 = vsyncmov [#allocation3 + $0x1] }
 0x3b0   :  { %s510_s8 = vpop.sfrf %509 }
 0x3b1   :  { %p863_p0 = scmp.ne.s32.totalorder %s510_s8, 0 }
 0x3b3   :  { %514 = shalt.err (%p863_p0)  }
 0x3b4   :  { %516 = vsyncmov [#allocation3 + $0x2] }
 0x3b7   :  { %s517_s25 = vpop.sfrf %516 }
 0x3b8   :  { %p864_p1 = scmp.ne.s32.totalorder %s517_s25, 0 }
 0x3ba   :  { %521 = shalt.err (%p864_p1)  }
 0x3bb   :  { %523 = vsyncmov [#allocation3 + $0x3] }
 0x3be   :  { %s524_s24 = vpop.sfrf %523 }
 0x3bf   :  { %p865_p5 = scmp.ne.s32.totalorder %s524_s24, 0 }
 0x3c1   :  { %528 = shalt.err (%p865_p5)  }
 0x3c2   :  { %530 = vsyncmov [#allocation3 + $0x4] }
 0x3c5   :  { %s531_s2 = vpop.sfrf %530 }
 0x3c6   :  { %p866_p12 = scmp.ne.s32.totalorder %s531_s2, 0 }
 0x3c8   :  { %535 = shalt.err (%p866_p12)  }
 0x3c9   :  { %537 = vsyncmov [#allocation3 + $0x5] }
 0x3cc   :  { %s538_s26 = vpop.sfrf %537 }
 0x3cd   :  { %p867_p7 = scmp.ne.s32.totalorder %s538_s26, 0 }
 0x3cf   :  { %542 = shalt.err (%p867_p7)  }
 0x3d0   :  { %544 = vsyncmov [#allocation3 + $0x6] }
 0x3d3   :  { %s545_s21 = vpop.sfrf %544 }
 0x3d4   :  { %p868_p8 = scmp.ne.s32.totalorder %s545_s21, 0 }
 0x3d6   :  { %549 = shalt.err (%p868_p8)  }
 0x3d7   :  { %551 = vsyncmov [#allocation3 + $0x7] }
 0x3da   :  { %s552_s18 = vpop.sfrf %551 }
 0x3db   :  { %p869_p9 = scmp.ne.s32.totalorder %s552_s18, 0 }
 0x3dd   :  { %556 = shalt.err (%p869_p9)  }
 0x3de   :  { %558 = vsyncmov [#allocation3 + $0x8] }
 0x3e1   :  { %s559_s14 = vpop.sfrf %558 }
 0x3e2   :  { %p870_p10 = scmp.ne.s32.totalorder %s559_s14, 0 }
 0x3e4   :  { %563 = shalt.err (%p870_p10)  }
 0x3e5   :  { %565 = vsyncmov [#allocation3 + $0x9] }
 0x3e8   :  { %s566_s23 = vpop.sfrf %565 }
 0x3e9   :  { %p871_p2 = scmp.ne.s32.totalorder %s566_s23, 0 }
 0x3eb   :  { %570 = shalt.err (%p871_p2)  }
 0x3ec   :  { %572 = vsyncmov [#allocation3 + $0xa] }
 0x3ef   :  { %s573_s17 = vpop.sfrf %572 }
 0x3f0   :  { %p872_p3 = scmp.ne.s32.totalorder %s573_s17, 0 }
 0x3f2   :  { %577 = shalt.err (%p872_p3)  }
 0x3f3   :  { %579 = vsyncmov [#allocation3 + $0xb] }
 0x3f6   :  { %s580_s30 = vpop.sfrf %579 }
 0x3f7   :  { %p873_p4 = scmp.ne.s32.totalorder %s580_s30, 0 }
 0x3f9   :  { %584 = shalt.err (%p873_p4)  }
 0x3fa   :  { %586 = vsyncmov [#allocation3 + $0xc] }
 0x3fd   :  { %s587_s29 = vpop.sfrf %586 }
 0x3fe   :  { %p874_p11 = scmp.ne.s32.totalorder %s587_s29, 0 }
 0x400   :  { %591 = shalt.err (%p874_p11)  }
 0x401   :  { %593 = vsyncmov [#allocation3 + $0xd] }
 0x404   :  { %s594_s10 = vpop.sfrf %593 }
 0x405   :  { %p875_p6 = scmp.ne.s32.totalorder %s594_s10, 0 }
 0x407   :  { %598 = shalt.err (%p875_p6)  }
 0x408   :  { %600 = vsyncmov [#allocation3 + $0xe] }
 0x40b   :  { %s601_s22 = vpop.sfrf %600 }
 0x40c   :  { %p876_p13 = scmp.ne.s32.totalorder %s601_s22, 0 }
 0x40e   :  { %605 = shalt.err (%p876_p13)  }
 0x40f   :  { %607 = vsyncmov [#allocation3 + $0xf] }
 0x412   :  { %s608_s11 = vpop.sfrf %607 }
 0x413   :  { %p877_p0 = scmp.ne.s32.totalorder %s608_s11, 0 }
 0x415   :  { %612 = shalt.err (%p877_p0)  }

</bundles_post_ra>
